<compile_context>
chip_gen: v6e
topology: v6e:2x2x1
jax: 0.10.0
libtpu: 0.0.40
codegen_flags: <defaults>
</compile_context>

<pallas_src>
import functools

import jax
import jax.numpy as jnp
import numpy as np
from jax.experimental import pallas as pl
from jax.experimental.pallas import tpu as pltpu


# ----------------------------------------------------------------------------
# Pallas kernel: one batch chunk per grid step (default: the full batch).
# ----------------------------------------------------------------------------
def _dcgru_cell_kernel(z0_ref, h_ref, sup_ref,
                       wgr_ref, wgu_ref, wcx_ref, wch_ref,
                       bgr_ref, bgu_ref, bcand_ref,
                       out_ref, *, num_supports, max_diffusion_step):
    f32, bf16 = jnp.float32, jnp.bfloat16

    z0 = z0_ref[0]      # (N, Bc*D) f32 -- node-major, batch folded into lanes
    h = h_ref[0]        # (N, Bc*U) f32

    def wdot(x, w_ref, k):
        # (N, Bc*Din) @ (Bc*Din, Bc*Dout) block-diagonal weight; bf16 MXU, f32 acc.
        return jnp.dot(x.astype(bf16), w_ref[k], preferred_element_type=f32)

    def adot(a, x):
        # (N, N) @ (N, Bc*F) diffusion matmul; bf16 MXU, f32 acc.
        return jnp.dot(a, x.astype(bf16), preferred_element_type=f32)

    # ---- joint diffusion of [x, h]; stream every state straight into the three
    # ---- accumulators (r-gate, u-gate, candidate-x) -- no concatenation needed.
    r_pre = wdot(z0, wgr_ref, 0)
    u_pre = wdot(z0, wgu_ref, 0)
    cx_pre = wdot(z0, wcx_ref, 0)
    k = 1
    for s in range(num_supports):
        a = sup_ref[s]                               # (N, N) bf16
        z_km2 = z0
        z_km1 = adot(a, z0)
        r_pre += wdot(z_km1, wgr_ref, k)
        u_pre += wdot(z_km1, wgu_ref, k)
        cx_pre += wdot(z_km1, wcx_ref, k)
        k += 1
        for _ in range(2, max_diffusion_step + 1):
            z_k = 2.0 * adot(a, z_km1) - z_km2       # Chebyshev recurrence in f32
            r_pre += wdot(z_k, wgr_ref, k)
            u_pre += wdot(z_k, wgu_ref, k)
            cx_pre += wdot(z_k, wcx_ref, k)
            k += 1
            z_km2, z_km1 = z_km1, z_k

    r = jax.nn.sigmoid(r_pre + bgr_ref[...])         # (N, Bc*U)
    u = jax.nn.sigmoid(u_pre + bgu_ref[...])
    rh = r * h

    # ---- diffusion of r*h for the candidate's h-part (x-part reused from above).
    ch_pre = wdot(rh, wch_ref, 0)
    k = 1
    for s in range(num_supports):
        a = sup_ref[s]
        y_km2 = rh
        y_km1 = adot(a, rh)
        ch_pre += wdot(y_km1, wch_ref, k)
        k += 1
        for _ in range(2, max_diffusion_step + 1):
            y_k = 2.0 * adot(a, y_km1) - y_km2
            ch_pre += wdot(y_k, wch_ref, k)
            k += 1
            y_km2, y_km1 = y_km1, y_k

    c = jnp.tanh(cx_pre + ch_pre + bcand_ref[...])
    out_ref[0] = u * h + (1.0 - u) * c               # (N, Bc*U)


# ----------------------------------------------------------------------------
# Wrapper (all layout plumbing is plain-JAX glue outside the kernel).
# ----------------------------------------------------------------------------
def dcgru_cell_forward(supports, inputs_flat, state_flat, params, *,
                       input_dim, num_units, num_nodes,
                       max_diffusion_step, num_supports, batch_block=None):
    """Pallas implementation of DCGRUCell.forward.

    supports    : (S, N, N) float32 dense diffusion matrices
    inputs_flat : (B, N * input_dim)  float32 (same flattening as the PyTorch module)
    state_flat  : (B, N * num_units)  float32
    returns (output, output) with output: (B, N * num_units)
    """
    B = inputs_flat.shape[0]
    N, U = num_nodes, num_units
    D = input_dim + num_units
    K = num_supports * max_diffusion_step + 1

    bc = B if batch_block is None else batch_block   # batch chunk per grid step
    if B % bc != 0:
        raise ValueError("batch_block must divide the batch size")
    G = B // bc                                      # parallel grid extent

    inputs = inputs_flat.reshape(B, N, input_dim).astype(jnp.float32)
    state = state_flat.reshape(B, N, U).astype(jnp.float32)

    # ---- glue: node-major chunked layouts (G, N, bc*F), lane index = b'*F + f.
    def to_chunks(x, F):
        return jnp.transpose(x.reshape(G, bc, N, F), (0, 2, 1, 3)).reshape(G, N, bc * F)

    z0 = to_chunks(jnp.concatenate([inputs, state], axis=-1), D)     # (G, N, bc*D)
    h_nm = to_chunks(state, U)                                       # (G, N, bc*U)

    # ---- glue: weights.  PyTorch rows are d*K + k -> (K, D, out); split gate into
    # r / u halves, candidate into x / h parts, then expand to per-chunk
    # block-diagonal (bc*Din, bc*Dout) bf16 matrices (done once, outside the kernel).
    def reorder(w, out_dim):
        return jnp.transpose(w.reshape(D, K, out_dim), (1, 0, 2))    # (K, D, out)

    def block_diag(w3):
        Kk, din, dout = w3.shape
        eye = jnp.eye(bc, dtype=w3.dtype)
        return jnp.einsum("ab,kij->kaibj", eye, w3).reshape(Kk, bc * din, bc * dout)

    wg3 = reorder(params["w_gate"], 2 * U)                           # (K, D, 2U)
    wc3 = reorder(params["w_cand"], U)                               # (K, D, U)
    d_idx = jnp.arange(D)[None, :, None]
    wcx3 = jnp.where(d_idx < input_dim, wc3, 0.0)                    # x-rows, h-rows zeroed
    wch3 = wc3[:, input_dim:, :]                                     # (K, U, U) h-rows

    wgr = block_diag(wg3[..., :U]).astype(jnp.bfloat16)
    wgu = block_diag(wg3[..., U:]).astype(jnp.bfloat16)
    wcx = block_diag(wcx3).astype(jnp.bfloat16)
    wch = block_diag(wch3).astype(jnp.bfloat16)

    bgr = jnp.tile(params["b_gate"][:U].reshape(1, U), (1, bc)).astype(jnp.float32)
    bgu = jnp.tile(params["b_gate"][U:].reshape(1, U), (1, bc)).astype(jnp.float32)
    bcand = jnp.tile(params["b_cand"].reshape(1, U), (1, bc)).astype(jnp.float32)

    sup_bf16 = supports.astype(jnp.bfloat16)                         # (S, N, N)

    kernel = functools.partial(_dcgru_cell_kernel,
                               num_supports=num_supports,
                               max_diffusion_step=max_diffusion_step)

    # Advisory cost estimate for XLA scheduling around the custom call.
    kd, S = max_diffusion_step, num_supports
    flops = G * (2 * S * kd * N * N * bc * D            # diffusion of [x, h]
                 + 2 * S * kd * N * N * bc * U          # diffusion of r*h
                 + 3 * K * 2 * N * (bc * D) * (bc * U)  # r/u/candidate-x matmuls
                 + K * 2 * N * (bc * U) * (bc * U))     # candidate-h matmuls
    const_bytes = (sup_bf16.size * 2
                   + (wgr.size + wgu.size + wcx.size + wch.size) * 2
                   + (bgr.size + bgu.size + bcand.size) * 4)
    bytes_accessed = (z0.size + h_nm.size + B * N * U) * 4 + const_bytes
    cost = pl.CostEstimate(flops=int(flops),
                           transcendentals=int(3 * B * N * U),
                           bytes_accessed=int(bytes_accessed))

    # Explicit VMEM budget (re-derived so a port to v7x's 64 MiB stays in bounds):
    # double-buffered per-chunk blocks + chunk-invariant constants, with headroom.
    per_chunk_bytes = (N * bc * D + 2 * N * bc * U) * 4
    vmem_limit = int(min(32 * 2 ** 20,
                         max(4 * 2 ** 20, 4 * (2 * per_chunk_bytes + const_bytes))))

    out = pl.pallas_call(
        kernel,
        out_shape=jax.ShapeDtypeStruct((G, N, bc * U), jnp.float32),
        grid_spec=pltpu.PrefetchScalarGridSpec(
            num_scalar_prefetch=0,
            grid=(G,),
            in_specs=[
                pl.BlockSpec((1, N, bc * D), lambda g: (g, 0, 0)),        # z0 = [x, h]
                pl.BlockSpec((1, N, bc * U), lambda g: (g, 0, 0)),        # h
                pl.BlockSpec((num_supports, N, N), lambda g: (0, 0, 0)),  # supports
                pl.BlockSpec((K, bc * D, bc * U), lambda g: (0, 0, 0)),   # W_gate_r
                pl.BlockSpec((K, bc * D, bc * U), lambda g: (0, 0, 0)),   # W_gate_u
                pl.BlockSpec((K, bc * D, bc * U), lambda g: (0, 0, 0)),   # W_cand_x
                pl.BlockSpec((K, bc * U, bc * U), lambda g: (0, 0, 0)),   # W_cand_h
                pl.BlockSpec((1, bc * U), lambda g: (0, 0)),              # b_gate_r
                pl.BlockSpec((1, bc * U), lambda g: (0, 0)),              # b_gate_u
                pl.BlockSpec((1, bc * U), lambda g: (0, 0)),              # b_cand
            ],
            out_specs=pl.BlockSpec((1, N, bc * U), lambda g: (g, 0, 0)),
        ),
        compiler_params=pltpu.CompilerParams(
            dimension_semantics=("parallel",),
            vmem_limit_bytes=vmem_limit),
        cost_estimate=cost,
    )(z0, h_nm, sup_bf16, wgr, wgu, wcx, wch, bgr, bgu, bcand)

    # glue: (G, N, bc*U) node-major -> (B, N*U) (same flattening as PyTorch).
    output = jnp.transpose(out.reshape(G, N, bc, U), (0, 2, 1, 3)).reshape(B, N * U)
    return output, output


# ----------------------------------------------------------------------------
# Pure-JAX reference (mirrors the PyTorch semantics exactly, incl. weight layout).
# ----------------------------------------------------------------------------
def _diffusion_conv_ref(supports, inputs, state, weight, bias, max_diffusion_step):
    B, N, _ = inputs.shape
    x0 = jnp.concatenate([inputs, state], axis=2)           # (B, N, D)
    xs = [x0]
    for s in range(supports.shape[0]):
        a = supports[s]
        x1 = jnp.einsum("nm,bmd->bnd", a, x0)
        xs.append(x1)
        xkm2, xkm1 = x0, x1
        for _ in range(2, max_diffusion_step + 1):
            x2 = 2.0 * jnp.einsum("nm,bmd->bnd", a, xkm1) - xkm2
            xs.append(x2)
            xkm2, xkm1 = xkm1, x2
    x = jnp.stack(xs, axis=-1)                               # (B, N, D, K) rows d*K+k
    x = x.reshape(B * N, -1)
    x = x @ weight + bias
    return x.reshape(B, N, -1)


def dcgru_cell_ref(supports, inputs_flat, state_flat, params, *,
                   input_dim, num_units, num_nodes, max_diffusion_step):
    B = inputs_flat.shape[0]
    N, U = num_nodes, num_units
    inputs = inputs_flat.reshape(B, N, input_dim)
    state = state_flat.reshape(B, N, U)
    gates = jax.nn.sigmoid(_diffusion_conv_ref(
        supports, inputs, state, params["w_gate"], params["b_gate"],
        max_diffusion_step))
    r, u = gates[..., :U], gates[..., U:]
    c = jnp.tanh(_diffusion_conv_ref(
        supports, inputs, r * state, params["w_cand"], params["b_cand"],
        max_diffusion_step))
    out = u * state + (1.0 - u) * c
    return out.reshape(B, N * U)


# ----------------------------------------------------------------------------
# Main
# ----------------------------------------------------------------------------
if __name__ == "__main__":
    B = 2                   # batch
    N = 16                  # num_nodes
    input_dim = 4
    num_units = 32
    max_diffusion_step = 2
    num_supports = 2
    D = input_dim + num_units
    K = num_supports * max_diffusion_step + 1

    key = jax.random.PRNGKey(0)
    k_in, k_st, k_sup, k_wg, k_wc = jax.random.split(key, 5)

    inputs_flat = jax.random.normal(k_in, (B, N * input_dim), dtype=jnp.float32)
    state_flat = jax.random.normal(k_st, (B, N * num_units), dtype=jnp.float32)

    # Deterministic dense "supports" (row-normalized random adjacency-like matrices).
    raw = jax.random.uniform(k_sup, (num_supports, N, N), dtype=jnp.float32)
    supports = raw / jnp.sum(raw, axis=-1, keepdims=True)

    def xavier_uniform(k, shape):
        fan_in, fan_out = shape
        limit = np.sqrt(6.0 / (fan_in + fan_out))
        return jax.random.uniform(k, shape, jnp.float32, -limit, limit)

    params = {
        "w_gate": xavier_uniform(k_wg, (D * K, 2 * num_units)),
        "b_gate": jnp.zeros((2 * num_units,), jnp.float32),
        "w_cand": xavier_uniform(k_wc, (D * K, num_units)),
        "b_cand": jnp.zeros((num_units,), jnp.float32),
    }

    out, new_state = dcgru_cell_forward(
        supports, inputs_flat, state_flat, params,
        input_dim=input_dim, num_units=num_units, num_nodes=N,
        max_diffusion_step=max_diffusion_step, num_supports=num_supports)
    out = jax.block_until_ready(out)

    ref = dcgru_cell_ref(
        supports, inputs_flat, state_flat, params,
        input_dim=input_dim, num_units=num_units, num_nodes=N,
        max_diffusion_step=max_diffusion_step)
    # Tolerance loosened vs the pure-f32 version because MXU operands are bf16
    # (f32 accumulation); gate/candidate math and the Chebyshev recurrence stay f32.
    np.testing.assert_allclose(np.asarray(out), np.asarray(ref),
                               rtol=5e-2, atol=5e-2)

    print("KERNEL_OK")
</pallas_src>

<mosaic_0001>
module attributes {stable_mosaic.version = 11 : i64} {
  func.func @_dcgru_cell_kernel(%arg0: i32, %arg1: memref<1x16x72xf32, #tpu.memory_space<vmem>>, %arg2: memref<1x16x64xf32, #tpu.memory_space<vmem>>, %arg3: memref<2x16x16xbf16, #tpu.memory_space<vmem>>, %arg4: memref<5x72x64xbf16, #tpu.memory_space<vmem>>, %arg5: memref<5x72x64xbf16, #tpu.memory_space<vmem>>, %arg6: memref<5x72x64xbf16, #tpu.memory_space<vmem>>, %arg7: memref<5x64x64xbf16, #tpu.memory_space<vmem>>, %arg8: memref<1x64xf32, #tpu.memory_space<vmem>>, %arg9: memref<1x64xf32, #tpu.memory_space<vmem>>, %arg10: memref<1x64xf32, #tpu.memory_space<vmem>>, %arg11: memref<1x16x64xf32, #tpu.memory_space<vmem>>) attributes {dimension_semantics = [#tpu.dimension_semantics<parallel>], iteration_bounds = array<i64: 1>, scalar_prefetch = 0 : i64, scratch_operands = 0 : i64, tpu.core_type = #tpu.core_type<tc>, window_params = [{transform_indices = @transform_0, window_bounds = array<i64: 1, 16, 72>}, {transform_indices = @transform_1, window_bounds = array<i64: 1, 16, 64>}, {pipeline_mode = #tpu.pipeline_mode<synchronous>, transform_indices = @transform_2, window_bounds = array<i64: 2, 16, 16>}, {pipeline_mode = #tpu.pipeline_mode<synchronous>, transform_indices = @transform_3, window_bounds = array<i64: 5, 72, 64>}, {pipeline_mode = #tpu.pipeline_mode<synchronous>, transform_indices = @transform_4, window_bounds = array<i64: 5, 72, 64>}, {pipeline_mode = #tpu.pipeline_mode<synchronous>, transform_indices = @transform_5, window_bounds = array<i64: 5, 72, 64>}, {pipeline_mode = #tpu.pipeline_mode<synchronous>, transform_indices = @transform_6, window_bounds = array<i64: 5, 64, 64>}, {pipeline_mode = #tpu.pipeline_mode<synchronous>, transform_indices = @transform_7, window_bounds = array<i64: 1, 64>}, {pipeline_mode = #tpu.pipeline_mode<synchronous>, transform_indices = @transform_8, window_bounds = array<i64: 1, 64>}, {pipeline_mode = #tpu.pipeline_mode<synchronous>, transform_indices = @transform_9, window_bounds = array<i64: 1, 64>}, {transform_indices = @transform_10, window_bounds = array<i64: 1, 16, 64>}]} {
    %c0 = arith.constant 0 : index
    %c0_0 = arith.constant 0 : index
    %c0_1 = arith.constant 0 : index
    %0 = vector.load %arg1[%c0, %c0_0, %c0_1] : memref<1x16x72xf32, #tpu.memory_space<vmem>>, vector<1x16x72xf32>
    %1 = vector.shape_cast %0 : vector<1x16x72xf32> to vector<16x72xf32>
    %c0_2 = arith.constant 0 : index
    %c0_3 = arith.constant 0 : index
    %c0_4 = arith.constant 0 : index
    %2 = vector.load %arg2[%c0_2, %c0_3, %c0_4] : memref<1x16x64xf32, #tpu.memory_space<vmem>>, vector<1x16x64xf32>
    %3 = vector.shape_cast %2 : vector<1x16x64xf32> to vector<16x64xf32>
    %4 = arith.truncf %1 : vector<16x72xf32> to vector<16x72xbf16>
    %c0_5 = arith.constant 0 : index
    %c0_6 = arith.constant 0 : index
    %c0_7 = arith.constant 0 : index
    %5 = vector.load %arg4[%c0_5, %c0_6, %c0_7] : memref<5x72x64xbf16, #tpu.memory_space<vmem>>, vector<1x72x64xbf16>
    %6 = vector.shape_cast %5 : vector<1x72x64xbf16> to vector<72x64xbf16>
    %cst = arith.constant dense<0.000000e+00> : vector<16x64xf32>
    %7 = tpu.matmul %4, %6, %cst {dimension_numbers = #tpu.dot_dimension_numbers<[1], [0], [0], [1], [0, 0, 1, 1], [], []>} : vector<16x72xbf16>, vector<72x64xbf16>, vector<16x64xf32> -> vector<16x64xf32>
    %8 = arith.truncf %1 : vector<16x72xf32> to vector<16x72xbf16>
    %c0_8 = arith.constant 0 : index
    %c0_9 = arith.constant 0 : index
    %c0_10 = arith.constant 0 : index
    %9 = vector.load %arg5[%c0_8, %c0_9, %c0_10] : memref<5x72x64xbf16, #tpu.memory_space<vmem>>, vector<1x72x64xbf16>
    %10 = vector.shape_cast %9 : vector<1x72x64xbf16> to vector<72x64xbf16>
    %cst_11 = arith.constant dense<0.000000e+00> : vector<16x64xf32>
    %11 = tpu.matmul %8, %10, %cst_11 {dimension_numbers = #tpu.dot_dimension_numbers<[1], [0], [0], [1], [0, 0, 1, 1], [], []>} : vector<16x72xbf16>, vector<72x64xbf16>, vector<16x64xf32> -> vector<16x64xf32>
    %12 = arith.truncf %1 : vector<16x72xf32> to vector<16x72xbf16>
    %c0_12 = arith.constant 0 : index
    %c0_13 = arith.constant 0 : index
    %c0_14 = arith.constant 0 : index
    %13 = vector.load %arg6[%c0_12, %c0_13, %c0_14] : memref<5x72x64xbf16, #tpu.memory_space<vmem>>, vector<1x72x64xbf16>
    %14 = vector.shape_cast %13 : vector<1x72x64xbf16> to vector<72x64xbf16>
    %cst_15 = arith.constant dense<0.000000e+00> : vector<16x64xf32>
    %15 = tpu.matmul %12, %14, %cst_15 {dimension_numbers = #tpu.dot_dimension_numbers<[1], [0], [0], [1], [0, 0, 1, 1], [], []>} : vector<16x72xbf16>, vector<72x64xbf16>, vector<16x64xf32> -> vector<16x64xf32>
    %c0_16 = arith.constant 0 : index
    %c0_17 = arith.constant 0 : index
    %c0_18 = arith.constant 0 : index
    %16 = vector.load %arg3[%c0_16, %c0_17, %c0_18] : memref<2x16x16xbf16, #tpu.memory_space<vmem>>, vector<1x16x16xbf16>
    %17 = vector.shape_cast %16 : vector<1x16x16xbf16> to vector<16x16xbf16>
    %18 = arith.truncf %1 : vector<16x72xf32> to vector<16x72xbf16>
    %cst_19 = arith.constant dense<0.000000e+00> : vector<16x72xf32>
    %19 = tpu.matmul %17, %18, %cst_19 {dimension_numbers = #tpu.dot_dimension_numbers<[1], [0], [0], [1], [0, 0, 1, 1], [], []>} : vector<16x16xbf16>, vector<16x72xbf16>, vector<16x72xf32> -> vector<16x72xf32>
    %20 = arith.truncf %19 : vector<16x72xf32> to vector<16x72xbf16>
    %c1 = arith.constant 1 : index
    %c0_20 = arith.constant 0 : index
    %c0_21 = arith.constant 0 : index
    %21 = vector.load %arg4[%c1, %c0_20, %c0_21] : memref<5x72x64xbf16, #tpu.memory_space<vmem>>, vector<1x72x64xbf16>
    %22 = vector.shape_cast %21 : vector<1x72x64xbf16> to vector<72x64xbf16>
    %cst_22 = arith.constant dense<0.000000e+00> : vector<16x64xf32>
    %23 = tpu.matmul %20, %22, %cst_22 {dimension_numbers = #tpu.dot_dimension_numbers<[1], [0], [0], [1], [0, 0, 1, 1], [], []>} : vector<16x72xbf16>, vector<72x64xbf16>, vector<16x64xf32> -> vector<16x64xf32>
    %24 = arith.addf %7, %23 : vector<16x64xf32>
    %25 = arith.truncf %19 : vector<16x72xf32> to vector<16x72xbf16>
    %c1_23 = arith.constant 1 : index
    %c0_24 = arith.constant 0 : index
    %c0_25 = arith.constant 0 : index
    %26 = vector.load %arg5[%c1_23, %c0_24, %c0_25] : memref<5x72x64xbf16, #tpu.memory_space<vmem>>, vector<1x72x64xbf16>
    %27 = vector.shape_cast %26 : vector<1x72x64xbf16> to vector<72x64xbf16>
    %cst_26 = arith.constant dense<0.000000e+00> : vector<16x64xf32>
    %28 = tpu.matmul %25, %27, %cst_26 {dimension_numbers = #tpu.dot_dimension_numbers<[1], [0], [0], [1], [0, 0, 1, 1], [], []>} : vector<16x72xbf16>, vector<72x64xbf16>, vector<16x64xf32> -> vector<16x64xf32>
    %29 = arith.addf %11, %28 : vector<16x64xf32>
    %30 = arith.truncf %19 : vector<16x72xf32> to vector<16x72xbf16>
    %c1_27 = arith.constant 1 : index
    %c0_28 = arith.constant 0 : index
    %c0_29 = arith.constant 0 : index
    %31 = vector.load %arg6[%c1_27, %c0_28, %c0_29] : memref<5x72x64xbf16, #tpu.memory_space<vmem>>, vector<1x72x64xbf16>
    %32 = vector.shape_cast %31 : vector<1x72x64xbf16> to vector<72x64xbf16>
    %cst_30 = arith.constant dense<0.000000e+00> : vector<16x64xf32>
    %33 = tpu.matmul %30, %32, %cst_30 {dimension_numbers = #tpu.dot_dimension_numbers<[1], [0], [0], [1], [0, 0, 1, 1], [], []>} : vector<16x72xbf16>, vector<72x64xbf16>, vector<16x64xf32> -> vector<16x64xf32>
    %34 = arith.addf %15, %33 : vector<16x64xf32>
    %35 = arith.truncf %19 : vector<16x72xf32> to vector<16x72xbf16>
    %cst_31 = arith.constant dense<0.000000e+00> : vector<16x72xf32>
    %36 = tpu.matmul %17, %35, %cst_31 {dimension_numbers = #tpu.dot_dimension_numbers<[1], [0], [0], [1], [0, 0, 1, 1], [], []>} : vector<16x16xbf16>, vector<16x72xbf16>, vector<16x72xf32> -> vector<16x72xf32>
    %cst_32 = arith.constant 2.000000e+00 : f32
    %37 = vector.broadcast %cst_32 : f32 to vector<16x72xf32>
    %38 = arith.mulf %37, %36 : vector<16x72xf32>
    %39 = arith.subf %38, %1 : vector<16x72xf32>
    %40 = arith.truncf %39 : vector<16x72xf32> to vector<16x72xbf16>
    %c2 = arith.constant 2 : index
    %c0_33 = arith.constant 0 : index
    %c0_34 = arith.constant 0 : index
    %41 = vector.load %arg4[%c2, %c0_33, %c0_34] : memref<5x72x64xbf16, #tpu.memory_space<vmem>>, vector<1x72x64xbf16>
    %42 = vector.shape_cast %41 : vector<1x72x64xbf16> to vector<72x64xbf16>
    %cst_35 = arith.constant dense<0.000000e+00> : vector<16x64xf32>
    %43 = tpu.matmul %40, %42, %cst_35 {dimension_numbers = #tpu.dot_dimension_numbers<[1], [0], [0], [1], [0, 0, 1, 1], [], []>} : vector<16x72xbf16>, vector<72x64xbf16>, vector<16x64xf32> -> vector<16x64xf32>
    %44 = arith.addf %24, %43 : vector<16x64xf32>
    %45 = arith.truncf %39 : vector<16x72xf32> to vector<16x72xbf16>
    %c2_36 = arith.constant 2 : index
    %c0_37 = arith.constant 0 : index
    %c0_38 = arith.constant 0 : index
    %46 = vector.load %arg5[%c2_36, %c0_37, %c0_38] : memref<5x72x64xbf16, #tpu.memory_space<vmem>>, vector<1x72x64xbf16>
    %47 = vector.shape_cast %46 : vector<1x72x64xbf16> to vector<72x64xbf16>
    %cst_39 = arith.constant dense<0.000000e+00> : vector<16x64xf32>
    %48 = tpu.matmul %45, %47, %cst_39 {dimension_numbers = #tpu.dot_dimension_numbers<[1], [0], [0], [1], [0, 0, 1, 1], [], []>} : vector<16x72xbf16>, vector<72x64xbf16>, vector<16x64xf32> -> vector<16x64xf32>
    %49 = arith.addf %29, %48 : vector<16x64xf32>
    %50 = arith.truncf %39 : vector<16x72xf32> to vector<16x72xbf16>
    %c2_40 = arith.constant 2 : index
    %c0_41 = arith.constant 0 : index
    %c0_42 = arith.constant 0 : index
    %51 = vector.load %arg6[%c2_40, %c0_41, %c0_42] : memref<5x72x64xbf16, #tpu.memory_space<vmem>>, vector<1x72x64xbf16>
    %52 = vector.shape_cast %51 : vector<1x72x64xbf16> to vector<72x64xbf16>
    %cst_43 = arith.constant dense<0.000000e+00> : vector<16x64xf32>
    %53 = tpu.matmul %50, %52, %cst_43 {dimension_numbers = #tpu.dot_dimension_numbers<[1], [0], [0], [1], [0, 0, 1, 1], [], []>} : vector<16x72xbf16>, vector<72x64xbf16>, vector<16x64xf32> -> vector<16x64xf32>
    %54 = arith.addf %34, %53 : vector<16x64xf32>
    %c1_44 = arith.constant 1 : index
    %c0_45 = arith.constant 0 : index
    %c0_46 = arith.constant 0 : index
    %55 = vector.load %arg3[%c1_44, %c0_45, %c0_46] : memref<2x16x16xbf16, #tpu.memory_space<vmem>>, vector<1x16x16xbf16>
    %56 = vector.shape_cast %55 : vector<1x16x16xbf16> to vector<16x16xbf16>
    %57 = arith.truncf %1 : vector<16x72xf32> to vector<16x72xbf16>
    %cst_47 = arith.constant dense<0.000000e+00> : vector<16x72xf32>
    %58 = tpu.matmul %56, %57, %cst_47 {dimension_numbers = #tpu.dot_dimension_numbers<[1], [0], [0], [1], [0, 0, 1, 1], [], []>} : vector<16x16xbf16>, vector<16x72xbf16>, vector<16x72xf32> -> vector<16x72xf32>
    %59 = arith.truncf %58 : vector<16x72xf32> to vector<16x72xbf16>
    %c3 = arith.constant 3 : index
    %c0_48 = arith.constant 0 : index
    %c0_49 = arith.constant 0 : index
    %60 = vector.load %arg4[%c3, %c0_48, %c0_49] : memref<5x72x64xbf16, #tpu.memory_space<vmem>>, vector<1x72x64xbf16>
    %61 = vector.shape_cast %60 : vector<1x72x64xbf16> to vector<72x64xbf16>
    %cst_50 = arith.constant dense<0.000000e+00> : vector<16x64xf32>
    %62 = tpu.matmul %59, %61, %cst_50 {dimension_numbers = #tpu.dot_dimension_numbers<[1], [0], [0], [1], [0, 0, 1, 1], [], []>} : vector<16x72xbf16>, vector<72x64xbf16>, vector<16x64xf32> -> vector<16x64xf32>
    %63 = arith.addf %44, %62 : vector<16x64xf32>
    %64 = arith.truncf %58 : vector<16x72xf32> to vector<16x72xbf16>
    %c3_51 = arith.constant 3 : index
    %c0_52 = arith.constant 0 : index
    %c0_53 = arith.constant 0 : index
    %65 = vector.load %arg5[%c3_51, %c0_52, %c0_53] : memref<5x72x64xbf16, #tpu.memory_space<vmem>>, vector<1x72x64xbf16>
    %66 = vector.shape_cast %65 : vector<1x72x64xbf16> to vector<72x64xbf16>
    %cst_54 = arith.constant dense<0.000000e+00> : vector<16x64xf32>
    %67 = tpu.matmul %64, %66, %cst_54 {dimension_numbers = #tpu.dot_dimension_numbers<[1], [0], [0], [1], [0, 0, 1, 1], [], []>} : vector<16x72xbf16>, vector<72x64xbf16>, vector<16x64xf32> -> vector<16x64xf32>
    %68 = arith.addf %49, %67 : vector<16x64xf32>
    %69 = arith.truncf %58 : vector<16x72xf32> to vector<16x72xbf16>
    %c3_55 = arith.constant 3 : index
    %c0_56 = arith.constant 0 : index
    %c0_57 = arith.constant 0 : index
    %70 = vector.load %arg6[%c3_55, %c0_56, %c0_57] : memref<5x72x64xbf16, #tpu.memory_space<vmem>>, vector<1x72x64xbf16>
    %71 = vector.shape_cast %70 : vector<1x72x64xbf16> to vector<72x64xbf16>
    %cst_58 = arith.constant dense<0.000000e+00> : vector<16x64xf32>
    %72 = tpu.matmul %69, %71, %cst_58 {dimension_numbers = #tpu.dot_dimension_numbers<[1], [0], [0], [1], [0, 0, 1, 1], [], []>} : vector<16x72xbf16>, vector<72x64xbf16>, vector<16x64xf32> -> vector<16x64xf32>
    %73 = arith.addf %54, %72 : vector<16x64xf32>
    %74 = arith.truncf %58 : vector<16x72xf32> to vector<16x72xbf16>
    %cst_59 = arith.constant dense<0.000000e+00> : vector<16x72xf32>
    %75 = tpu.matmul %56, %74, %cst_59 {dimension_numbers = #tpu.dot_dimension_numbers<[1], [0], [0], [1], [0, 0, 1, 1], [], []>} : vector<16x16xbf16>, vector<16x72xbf16>, vector<16x72xf32> -> vector<16x72xf32>
    %cst_60 = arith.constant 2.000000e+00 : f32
    %76 = vector.broadcast %cst_60 : f32 to vector<16x72xf32>
    %77 = arith.mulf %76, %75 : vector<16x72xf32>
    %78 = arith.subf %77, %1 : vector<16x72xf32>
    %79 = arith.truncf %78 : vector<16x72xf32> to vector<16x72xbf16>
    %c4 = arith.constant 4 : index
    %c0_61 = arith.constant 0 : index
    %c0_62 = arith.constant 0 : index
    %80 = vector.load %arg4[%c4, %c0_61, %c0_62] : memref<5x72x64xbf16, #tpu.memory_space<vmem>>, vector<1x72x64xbf16>
    %81 = vector.shape_cast %80 : vector<1x72x64xbf16> to vector<72x64xbf16>
    %cst_63 = arith.constant dense<0.000000e+00> : vector<16x64xf32>
    %82 = tpu.matmul %79, %81, %cst_63 {dimension_numbers = #tpu.dot_dimension_numbers<[1], [0], [0], [1], [0, 0, 1, 1], [], []>} : vector<16x72xbf16>, vector<72x64xbf16>, vector<16x64xf32> -> vector<16x64xf32>
    %83 = arith.addf %63, %82 : vector<16x64xf32>
    %84 = arith.truncf %78 : vector<16x72xf32> to vector<16x72xbf16>
    %c4_64 = arith.constant 4 : index
    %c0_65 = arith.constant 0 : index
    %c0_66 = arith.constant 0 : index
    %85 = vector.load %arg5[%c4_64, %c0_65, %c0_66] : memref<5x72x64xbf16, #tpu.memory_space<vmem>>, vector<1x72x64xbf16>
    %86 = vector.shape_cast %85 : vector<1x72x64xbf16> to vector<72x64xbf16>
    %cst_67 = arith.constant dense<0.000000e+00> : vector<16x64xf32>
    %87 = tpu.matmul %84, %86, %cst_67 {dimension_numbers = #tpu.dot_dimension_numbers<[1], [0], [0], [1], [0, 0, 1, 1], [], []>} : vector<16x72xbf16>, vector<72x64xbf16>, vector<16x64xf32> -> vector<16x64xf32>
    %88 = arith.addf %68, %87 : vector<16x64xf32>
    %89 = arith.truncf %78 : vector<16x72xf32> to vector<16x72xbf16>
    %c4_68 = arith.constant 4 : index
    %c0_69 = arith.constant 0 : index
    %c0_70 = arith.constant 0 : index
    %90 = vector.load %arg6[%c4_68, %c0_69, %c0_70] : memref<5x72x64xbf16, #tpu.memory_space<vmem>>, vector<1x72x64xbf16>
    %91 = vector.shape_cast %90 : vector<1x72x64xbf16> to vector<72x64xbf16>
    %cst_71 = arith.constant dense<0.000000e+00> : vector<16x64xf32>
    %92 = tpu.matmul %89, %91, %cst_71 {dimension_numbers = #tpu.dot_dimension_numbers<[1], [0], [0], [1], [0, 0, 1, 1], [], []>} : vector<16x72xbf16>, vector<72x64xbf16>, vector<16x64xf32> -> vector<16x64xf32>
    %93 = arith.addf %73, %92 : vector<16x64xf32>
    %c0_72 = arith.constant 0 : index
    %c0_73 = arith.constant 0 : index
    %94 = vector.load %arg8[%c0_72, %c0_73] : memref<1x64xf32, #tpu.memory_space<vmem>>, vector<1x64xf32>
    %95 = vector.broadcast %94 : vector<1x64xf32> to vector<16x64xf32>
    %96 = arith.addf %83, %95 : vector<16x64xf32>
    %97 = arith.negf %96 : vector<16x64xf32>
    %98 = math.exp %97 : vector<16x64xf32>
    %cst_74 = arith.constant 1.000000e+00 : f32
    %99 = vector.broadcast %cst_74 : f32 to vector<16x64xf32>
    %100 = arith.addf %99, %98 : vector<16x64xf32>
    %101 = arith.divf %99, %100 : vector<16x64xf32>
    %c0_75 = arith.constant 0 : index
    %c0_76 = arith.constant 0 : index
    %102 = vector.load %arg9[%c0_75, %c0_76] : memref<1x64xf32, #tpu.memory_space<vmem>>, vector<1x64xf32>
    %103 = vector.broadcast %102 : vector<1x64xf32> to vector<16x64xf32>
    %104 = arith.addf %88, %103 : vector<16x64xf32>
    %105 = arith.negf %104 : vector<16x64xf32>
    %106 = math.exp %105 : vector<16x64xf32>
    %cst_77 = arith.constant 1.000000e+00 : f32
    %107 = vector.broadcast %cst_77 : f32 to vector<16x64xf32>
    %108 = arith.addf %107, %106 : vector<16x64xf32>
    %109 = arith.divf %107, %108 : vector<16x64xf32>
    %110 = arith.mulf %101, %3 : vector<16x64xf32>
    %111 = arith.truncf %110 : vector<16x64xf32> to vector<16x64xbf16>
    %c0_78 = arith.constant 0 : index
    %c0_79 = arith.constant 0 : index
    %c0_80 = arith.constant 0 : index
    %112 = vector.load %arg7[%c0_78, %c0_79, %c0_80] : memref<5x64x64xbf16, #tpu.memory_space<vmem>>, vector<1x64x64xbf16>
    %113 = vector.shape_cast %112 : vector<1x64x64xbf16> to vector<64x64xbf16>
    %cst_81 = arith.constant dense<0.000000e+00> : vector<16x64xf32>
    %114 = tpu.matmul %111, %113, %cst_81 {dimension_numbers = #tpu.dot_dimension_numbers<[1], [0], [0], [1], [0, 0, 1, 1], [], []>} : vector<16x64xbf16>, vector<64x64xbf16>, vector<16x64xf32> -> vector<16x64xf32>
    %c0_82 = arith.constant 0 : index
    %c0_83 = arith.constant 0 : index
    %c0_84 = arith.constant 0 : index
    %115 = vector.load %arg3[%c0_82, %c0_83, %c0_84] : memref<2x16x16xbf16, #tpu.memory_space<vmem>>, vector<1x16x16xbf16>
    %116 = vector.shape_cast %115 : vector<1x16x16xbf16> to vector<16x16xbf16>
    %117 = arith.truncf %110 : vector<16x64xf32> to vector<16x64xbf16>
    %cst_85 = arith.constant dense<0.000000e+00> : vector<16x64xf32>
    %118 = tpu.matmul %116, %117, %cst_85 {dimension_numbers = #tpu.dot_dimension_numbers<[1], [0], [0], [1], [0, 0, 1, 1], [], []>} : vector<16x16xbf16>, vector<16x64xbf16>, vector<16x64xf32> -> vector<16x64xf32>
    %119 = arith.truncf %118 : vector<16x64xf32> to vector<16x64xbf16>
    %c1_86 = arith.constant 1 : index
    %c0_87 = arith.constant 0 : index
    %c0_88 = arith.constant 0 : index
    %120 = vector.load %arg7[%c1_86, %c0_87, %c0_88] : memref<5x64x64xbf16, #tpu.memory_space<vmem>>, vector<1x64x64xbf16>
    %121 = vector.shape_cast %120 : vector<1x64x64xbf16> to vector<64x64xbf16>
    %cst_89 = arith.constant dense<0.000000e+00> : vector<16x64xf32>
    %122 = tpu.matmul %119, %121, %cst_89 {dimension_numbers = #tpu.dot_dimension_numbers<[1], [0], [0], [1], [0, 0, 1, 1], [], []>} : vector<16x64xbf16>, vector<64x64xbf16>, vector<16x64xf32> -> vector<16x64xf32>
    %123 = arith.addf %114, %122 : vector<16x64xf32>
    %124 = arith.truncf %118 : vector<16x64xf32> to vector<16x64xbf16>
    %cst_90 = arith.constant dense<0.000000e+00> : vector<16x64xf32>
    %125 = tpu.matmul %116, %124, %cst_90 {dimension_numbers = #tpu.dot_dimension_numbers<[1], [0], [0], [1], [0, 0, 1, 1], [], []>} : vector<16x16xbf16>, vector<16x64xbf16>, vector<16x64xf32> -> vector<16x64xf32>
    %cst_91 = arith.constant 2.000000e+00 : f32
    %126 = vector.broadcast %cst_91 : f32 to vector<16x64xf32>
    %127 = arith.mulf %126, %125 : vector<16x64xf32>
    %128 = arith.subf %127, %110 : vector<16x64xf32>
    %129 = arith.truncf %128 : vector<16x64xf32> to vector<16x64xbf16>
    %c2_92 = arith.constant 2 : index
    %c0_93 = arith.constant 0 : index
    %c0_94 = arith.constant 0 : index
    %130 = vector.load %arg7[%c2_92, %c0_93, %c0_94] : memref<5x64x64xbf16, #tpu.memory_space<vmem>>, vector<1x64x64xbf16>
    %131 = vector.shape_cast %130 : vector<1x64x64xbf16> to vector<64x64xbf16>
    %cst_95 = arith.constant dense<0.000000e+00> : vector<16x64xf32>
    %132 = tpu.matmul %129, %131, %cst_95 {dimension_numbers = #tpu.dot_dimension_numbers<[1], [0], [0], [1], [0, 0, 1, 1], [], []>} : vector<16x64xbf16>, vector<64x64xbf16>, vector<16x64xf32> -> vector<16x64xf32>
    %133 = arith.addf %123, %132 : vector<16x64xf32>
    %c1_96 = arith.constant 1 : index
    %c0_97 = arith.constant 0 : index
    %c0_98 = arith.constant 0 : index
    %134 = vector.load %arg3[%c1_96, %c0_97, %c0_98] : memref<2x16x16xbf16, #tpu.memory_space<vmem>>, vector<1x16x16xbf16>
    %135 = vector.shape_cast %134 : vector<1x16x16xbf16> to vector<16x16xbf16>
    %136 = arith.truncf %110 : vector<16x64xf32> to vector<16x64xbf16>
    %cst_99 = arith.constant dense<0.000000e+00> : vector<16x64xf32>
    %137 = tpu.matmul %135, %136, %cst_99 {dimension_numbers = #tpu.dot_dimension_numbers<[1], [0], [0], [1], [0, 0, 1, 1], [], []>} : vector<16x16xbf16>, vector<16x64xbf16>, vector<16x64xf32> -> vector<16x64xf32>
    %138 = arith.truncf %137 : vector<16x64xf32> to vector<16x64xbf16>
    %c3_100 = arith.constant 3 : index
    %c0_101 = arith.constant 0 : index
    %c0_102 = arith.constant 0 : index
    %139 = vector.load %arg7[%c3_100, %c0_101, %c0_102] : memref<5x64x64xbf16, #tpu.memory_space<vmem>>, vector<1x64x64xbf16>
    %140 = vector.shape_cast %139 : vector<1x64x64xbf16> to vector<64x64xbf16>
    %cst_103 = arith.constant dense<0.000000e+00> : vector<16x64xf32>
    %141 = tpu.matmul %138, %140, %cst_103 {dimension_numbers = #tpu.dot_dimension_numbers<[1], [0], [0], [1], [0, 0, 1, 1], [], []>} : vector<16x64xbf16>, vector<64x64xbf16>, vector<16x64xf32> -> vector<16x64xf32>
    %142 = arith.addf %133, %141 : vector<16x64xf32>
    %143 = arith.truncf %137 : vector<16x64xf32> to vector<16x64xbf16>
    %cst_104 = arith.constant dense<0.000000e+00> : vector<16x64xf32>
    %144 = tpu.matmul %135, %143, %cst_104 {dimension_numbers = #tpu.dot_dimension_numbers<[1], [0], [0], [1], [0, 0, 1, 1], [], []>} : vector<16x16xbf16>, vector<16x64xbf16>, vector<16x64xf32> -> vector<16x64xf32>
    %cst_105 = arith.constant 2.000000e+00 : f32
    %145 = vector.broadcast %cst_105 : f32 to vector<16x64xf32>
    %146 = arith.mulf %145, %144 : vector<16x64xf32>
    %147 = arith.subf %146, %110 : vector<16x64xf32>
    %148 = arith.truncf %147 : vector<16x64xf32> to vector<16x64xbf16>
    %c4_106 = arith.constant 4 : index
    %c0_107 = arith.constant 0 : index
    %c0_108 = arith.constant 0 : index
    %149 = vector.load %arg7[%c4_106, %c0_107, %c0_108] : memref<5x64x64xbf16, #tpu.memory_space<vmem>>, vector<1x64x64xbf16>
    %150 = vector.shape_cast %149 : vector<1x64x64xbf16> to vector<64x64xbf16>
    %cst_109 = arith.constant dense<0.000000e+00> : vector<16x64xf32>
    %151 = tpu.matmul %148, %150, %cst_109 {dimension_numbers = #tpu.dot_dimension_numbers<[1], [0], [0], [1], [0, 0, 1, 1], [], []>} : vector<16x64xbf16>, vector<64x64xbf16>, vector<16x64xf32> -> vector<16x64xf32>
    %152 = arith.addf %142, %151 : vector<16x64xf32>
    %153 = arith.addf %93, %152 : vector<16x64xf32>
    %c0_110 = arith.constant 0 : index
    %c0_111 = arith.constant 0 : index
    %154 = vector.load %arg10[%c0_110, %c0_111] : memref<1x64xf32, #tpu.memory_space<vmem>>, vector<1x64xf32>
    %155 = vector.broadcast %154 : vector<1x64xf32> to vector<16x64xf32>
    %156 = arith.addf %153, %155 : vector<16x64xf32>
    %157 = math.tanh %156 : vector<16x64xf32>
    %158 = arith.mulf %109, %3 : vector<16x64xf32>
    %cst_112 = arith.constant 1.000000e+00 : f32
    %159 = vector.broadcast %cst_112 : f32 to vector<16x64xf32>
    %160 = arith.subf %159, %109 : vector<16x64xf32>
    %161 = arith.mulf %160, %157 : vector<16x64xf32>
    %162 = arith.addf %158, %161 : vector<16x64xf32>
    %c0_113 = arith.constant 0 : index
    %c0_114 = arith.constant 0 : index
    %c0_115 = arith.constant 0 : index
    %163 = vector.load %arg11[%c0_113, %c0_114, %c0_115] : memref<1x16x64xf32, #tpu.memory_space<vmem>>, vector<1x16x64xf32>
    %164 = vector.shape_cast %163 : vector<1x16x64xf32> to vector<16x64xf32>
    %165 = vector.shape_cast %162 : vector<16x64xf32> to vector<1x16x64xf32>
    tpu.vector_store %arg11[%c0_113, %c0_114, %c0_115], %165 {strides = array<i32>} : memref<1x16x64xf32, #tpu.memory_space<vmem>>, vector<1x16x64xf32>,
    return
  }
  func.func @transform_0(%arg0: i32) -> (i32, i32, i32) {
    %c0_i32 = arith.constant 0 : i32
    %c0_i32_0 = arith.constant 0 : i32
    %c0_i32_1 = arith.constant 0 : i32
    return %arg0, %c0_i32, %c0_i32_0 : i32, i32, i32
  }
  func.func @transform_1(%arg0: i32) -> (i32, i32, i32) {
    %c0_i32 = arith.constant 0 : i32
    %c0_i32_0 = arith.constant 0 : i32
    %c0_i32_1 = arith.constant 0 : i32
    return %arg0, %c0_i32, %c0_i32_0 : i32, i32, i32
  }
  func.func @transform_2(%arg0: i32) -> (i32, i32, i32) {
    %c0_i32 = arith.constant 0 : i32
    %c0_i32_0 = arith.constant 0 : i32
    %c0_i32_1 = arith.constant 0 : i32
    %c0_i32_2 = arith.constant 0 : i32
    return %c0_i32, %c0_i32_0, %c0_i32_1 : i32, i32, i32
  }
  func.func @transform_3(%arg0: i32) -> (i32, i32, i32) {
    %c0_i32 = arith.constant 0 : i32
    %c0_i32_0 = arith.constant 0 : i32
    %c0_i32_1 = arith.constant 0 : i32
    %c0_i32_2 = arith.constant 0 : i32
    return %c0_i32, %c0_i32_0, %c0_i32_1 : i32, i32, i32
  }
  func.func @transform_4(%arg0: i32) -> (i32, i32, i32) {
    %c0_i32 = arith.constant 0 : i32
    %c0_i32_0 = arith.constant 0 : i32
    %c0_i32_1 = arith.constant 0 : i32
    %c0_i32_2 = arith.constant 0 : i32
    return %c0_i32, %c0_i32_0, %c0_i32_1 : i32, i32, i32
  }
  func.func @transform_5(%arg0: i32) -> (i32, i32, i32) {
    %c0_i32 = arith.constant 0 : i32
    %c0_i32_0 = arith.constant 0 : i32
    %c0_i32_1 = arith.constant 0 : i32
    %c0_i32_2 = arith.constant 0 : i32
    return %c0_i32, %c0_i32_0, %c0_i32_1 : i32, i32, i32
  }
  func.func @transform_6(%arg0: i32) -> (i32, i32, i32) {
    %c0_i32 = arith.constant 0 : i32
    %c0_i32_0 = arith.constant 0 : i32
    %c0_i32_1 = arith.constant 0 : i32
    %c0_i32_2 = arith.constant 0 : i32
    return %c0_i32, %c0_i32_0, %c0_i32_1 : i32, i32, i32
  }
  func.func @transform_7(%arg0: i32) -> (i32, i32) {
    %c0_i32 = arith.constant 0 : i32
    %c0_i32_0 = arith.constant 0 : i32
    %c0_i32_1 = arith.constant 0 : i32
    return %c0_i32, %c0_i32_0 : i32, i32
  }
  func.func @transform_8(%arg0: i32) -> (i32, i32) {
    %c0_i32 = arith.constant 0 : i32
    %c0_i32_0 = arith.constant 0 : i32
    %c0_i32_1 = arith.constant 0 : i32
    return %c0_i32, %c0_i32_0 : i32, i32
  }
  func.func @transform_9(%arg0: i32) -> (i32, i32) {
    %c0_i32 = arith.constant 0 : i32
    %c0_i32_0 = arith.constant 0 : i32
    %c0_i32_1 = arith.constant 0 : i32
    return %c0_i32, %c0_i32_0 : i32, i32
  }
  func.func @transform_10(%arg0: i32) -> (i32, i32, i32) {
    %c0_i32 = arith.constant 0 : i32
    %c0_i32_0 = arith.constant 0 : i32
    %c0_i32_1 = arith.constant 0 : i32
    return %arg0, %c0_i32, %c0_i32_0 : i32, i32, i32
  }
}

</mosaic_0001>

<bundles_post_ra>
// kernel: tpu_custom_call.1
= control target key start
LH: loop header
LB: loop body
LE: loop exit
PB: predicated region body
PF: predicated region fallthrough
CT: control target
= control target key end

     0   :  { %v3008_v2 = vmov 0.0   ;;  %vm3009_vm0 = vmmov 0   ;;  %vm76_vm1 = vcmask 130048   ;;  %vm163_vm2 = vcmask 1043456   ;;  %s3726_s0 = inlined_call_operand.vmem [shape: f32[1,16,72], index: 0, kind: input, shape index: {}]   ;;  %s3727_s1 = inlined_call_operand.vmem [shape: f32[1,16,64], index: 1, kind: input, shape index: {}]   ;;  %s3728_s2 = inlined_call_operand.vmem [shape: bf16[2,16,16], index: 2, kind: input, shape index: {}]   ;;  %s3729_s3 = inlined_call_operand.vmem [shape: bf16[5,72,64], index: 3, kind: input, shape index: {}]   ;;  %s3730_s4 = inlined_call_operand.vmem [shape: bf16[5,72,64], index: 4, kind: input, shape index: {}]   ;;  %s3731_s5 = inlined_call_operand.vmem [shape: bf16[5,72,64], index: 5, kind: input, shape index: {}]   ;;  %s3732_s6 = inlined_call_operand.vmem [shape: bf16[5,64,64], index: 6, kind: input, shape index: {}]   ;;  %s3733_s7 = inlined_call_operand.vmem [shape: f32[1,64], index: 7, kind: input, shape index: {}]   ;;  %s3734_s8 = inlined_call_operand.vmem [shape: f32[1,64], index: 8, kind: input, shape index: {}]   ;;  %s3735_s9 = inlined_call_operand.vmem [shape: f32[1,64], index: 9, kind: input, shape index: {}]   ;;  %s3736_s10 = inlined_call_operand.hbm [shape: f32[1,16,64], index: 10, kind: output, shape index: {}]  }
   0x1   :  { %v3071_v0 = vld [vmem:[%s3726_s0] sm:$0xff]  ;;  %v3076_v1 = vld [vmem:[%s3726_s0 + $0x8] sm:$0xff]  ;;  %2543 = vmatprep.subr.bf16.mxu0 %v3008_v2  ;;  %2545 = vmatprep.mubr.msk.bf16.mxu0 %vm3009_vm0, %v3008_v2  ;;  %v2870_v10 = vld [vmem:[%s3729_s3 + $0x18] sm:$0xff]  }
   0x2   :  { %v3081_v3 = vpack.c.bf16 %v3076_v1, %v3071_v0  ;;  %v3088_v4 = vld [vmem:[%s3728_s2] sm:$0xff]   ;;  %2549 = vmatprep.subr.bf16.mxu1 %v3008_v2  ;;  %2559 = vmatprep.mubr.msk.bf16.mxu1 %vm3009_vm0, %v3008_v2  ;;  %v2871_v11 = vld [vmem:[%s3729_s3 + $0x34] sm:$0xff]   ;;  %v2873_v13 = vld [vmem:[%s3729_s3 + $0x2c] sm:$0xff]  }
   0x3   :  { %v2867_v5 = vld [vmem:[%s3729_s3 + $0x44] ss:$0 sps:$4 sm:$0xff]   ;;  %v2868_v6 = vld [vmem:[%s3729_s3 + $0x20] ss:$0 sps:$4 sm:$0xff]   ;;  %v2872_v12 = vld [vmem:[%s3729_s3 + $0x10] sm:$0xff]  }
   0x4   :  { %2544 = vmatpush3.bf16.msra.mxu0 %v3081_v3  ;;  %v165_v7 = vsel %vm163_vm2, %v2867_v5, 0  ;;  %v239_v8 = vsel %vm163_vm2, %v2868_v6, 0  ;;  %v2869_v9 = vld [vmem:[%s3729_s3 + $0x3c] sm:$0xff]   ;;  %v2874_v14 = vld [vmem:[%s3729_s3 + $0x8] sm:$0xff]  }
   0x5   :  { %2563 = vmatprep.subr.bf16.mxu0 %v3008_v2  ;;  %2550 = vmatpush3.bf16.msra.mxu1 %v165_v7 }
   0x6   :  { %2551 = vmatprep.subr.bf16.mxu1 %v3008_v2 }
   0x7   :  { %2546 = vmatmul.mubr.msk.bf16.vlgmr.msra.gmra.mxu0 %vm76_vm1, %v3088_v4 }
   0x8   :  { %2564 = vmatpush3.bf16.msra.mxu0 %v239_v8  ;;  %2573 = vmatprep.mubr.msk.bf16.mxu0 %vm3009_vm0, %v3008_v2 }
   0x9   :  { %2565 = vmatprep.subr.bf16.mxu0 %v3008_v2  ;;  %2552 = vmatpush3.bf16.msra.mxu1 %v2869_v9 }
   0xa   :  { %2553 = vmatprep.subr.bf16.mxu1 %v3008_v2 }
   0xc   :  { %2566 = vmatpush3.bf16.msra.mxu0 %v2870_v10 }
   0xd   :  { %2567 = vmatprep.subr.bf16.mxu0 %v3008_v2  ;;  %2554 = vmatpush3.bf16.msra.mxu1 %v2871_v11 }
   0xe   :  { %2555 = vmatprep.subr.bf16.mxu1 %v3008_v2 }
  0x10   :  { %2568 = vmatpush3.bf16.msra.mxu0 %v2872_v12 }
  0x11   :  { %2569 = vmatprep.subr.bf16.mxu0 %v3008_v2  ;;  %2556 = vmatpush3.bf16.msra.mxu1 %v2873_v13 }
  0x12   :  { %2557 = vmatprep.subr.bf16.mxu1 %v3008_v2 }
  0x14   :  { %2570 = vmatpush3.bf16.msra.mxu0 %v2874_v14 }
  0x15   :  { %2571 = vmatprep.subr.bf16.mxu0 %v3008_v2 }
  0x16   :  { %15 = vsyncpa [#allocation3], 0  ;;  %v2875_v15 = vld [vmem:[%s3729_s3 + $0x24] sm:$0xff]   ;;  %v2878_v17 = vld [vmem:[%s3730_s4 + $0x20] ss:$0 sps:$4 sm:$0xff]   ;;  %vm159_vm3 = vcmask 588800  }
  0x17   :  { %v2876_v16 = vld [vmem:[%s3729_s3] sm:$0xff]   ;;  %2558 = vmatpush3.bf16.msra.mxu1 %v2875_v15  ;;  %v391_v18 = vsel %vm163_vm2, %v2878_v17, 0  ;;  %v2880_v19 = vld [vmem:[%s3730_s4 + $0x18] sm:$0xff]   ;;  %v2882_v20 = vld [vmem:[%s3730_s4 + $0x10] sm:$0xff]   ;;  %vm1615_vm4 = vcmask 523264  }
  0x18   :  { %2572 = vmatpush3.bf16.msra.mxu0 %v2876_v16  ;;  %2577 = vmatprep.subr.bf16.mxu1 %v3008_v2  ;;  %v2884_v21 = vld [vmem:[%s3730_s4 + $0x8] sm:$0xff]   ;;  %v2886_v22 = vld [vmem:[%s3730_s4] sm:$0xff]   ;;  %v2890_v25 = vld [vmem:[%s3731_s5 + $0x18] sm:$0xff]  }
  0x19   :  { %2591 = vmatprep.subr.bf16.mxu0 %v3008_v2  ;;  %v2888_v23 = vld [vmem:[%s3731_s5 + $0x20] ss:$0 sps:$4 sm:$0xff]   ;;  %v2892_v26 = vld [vmem:[%s3731_s5 + $0x10] sm:$0xff]   ;;  %v2894_v27 = vld [vmem:[%s3731_s5 + $0x8] sm:$0xff]  }
  0x1a   :  { %v543_v24 = vsel %vm163_vm2, %v2888_v23, 0  ;;  %v2896_v28 = vld [vmem:[%s3731_s5] sm:$0xff]   ;;  %v2881_v37 = vld [vmem:[%s3730_s4 + $0x34] sm:$0xff]   ;;  %v2883_v38 = vld [vmem:[%s3730_s4 + $0x2c] sm:$0xff]  }
  0x1b   :  { %2574 = vmatmul.mubr.msk.bf16.vlgmr.msra.gmra.mxu0 %vm159_vm3, %v3081_v3  ;;  %v2877_v30 = vld [vmem:[%s3730_s4 + $0x44] ss:$0 sps:$4 sm:$0xff]   ;;  %v2879_v36 = vld [vmem:[%s3730_s4 + $0x3c] sm:$0xff]   ;;  %v2891_v43 = vld [vmem:[%s3731_s5 + $0x34] sm:$0xff]  }
  0x1c   :  { %2592 = vmatpush3.bf16.msra.mxu0 %v391_v18  ;;  %2601 = vmatprep.mubr.msk.bf16.mxu0 %vm3009_vm0, %v3008_v2  ;;  %v320_v34 = vsel %vm163_vm2, %v2877_v30, 0  ;;  %v2885_v39 = vld [vmem:[%s3730_s4 + $0x24] sm:$0xff]   ;;  %v2889_v42 = vld [vmem:[%s3731_s5 + $0x3c] sm:$0xff]   ;;  %v2893_v44 = vld [vmem:[%s3731_s5 + $0x2c] sm:$0xff]  }
  0x1d   :  { %2593 = vmatprep.subr.bf16.mxu0 %v3008_v2  ;;  %v2887_v40 = vld [vmem:[%s3731_s5 + $0x44] ss:$0 sps:$4 sm:$0xff]   ;;  %v2897_v54 = vld [vmem:[%s3729_s3 + $0x68] ss:$0 sps:$4 sm:$0xff]   ;;  %v2901_v63 = vld [vmem:[%s3729_s3 + $0x58] sm:$0xff]  }
  0x1e   :  { %v472_v41 = vsel %vm163_vm2, %v2887_v40, 0  ;;  %v2895_v45 = vld [vmem:[%s3731_s5 + $0x24] sm:$0xff]   ;;  %v673_v55 = vsel %vm163_vm2, %v2897_v54, 0  ;;  %v2903_v6 = vld [vmem:[%s3729_s3 + $0x50] sm:$0xff]  }
  0x1f   :  { %v2898_v56 = vld [vmem:[%s3730_s4 + $0x68] ss:$0 sps:$4 sm:$0xff]   ;;  %v2899_v59 = vld [vmem:[%s3729_s3 + $0x60] sm:$0xff]   ;;  %v2904_v7 = vld [vmem:[%s3730_s4 + $0x50] sm:$0xff]  }
  0x20   :  { %2594 = vmatpush3.bf16.msra.mxu0 %v2880_v19  ;;  %v756_v57 = vsel %vm163_vm2, %v2898_v56, 0  ;;  %v2900_v61 = vld [vmem:[%s3730_s4 + $0x60] sm:$0xff]   ;;  %v2905_v8 = vld [vmem:[%s3729_s3 + $0x48] sm:$0xff]  }
  0x21   :  { %2595 = vmatprep.subr.bf16.mxu0 %v3008_v2  ;;  %v2906_v9 = vld [vmem:[%s3730_s4 + $0x48] sm:$0xff]  }
  0x22   :  { %v2916_v40 = vld [vmem:[%s3730_s4 + $0x84] sm:$0xff]  }
  0x24   :  { %2596 = vmatpush3.bf16.msra.mxu0 %v2882_v20 }
  0x25   :  { %2597 = vmatprep.subr.bf16.mxu0 %v3008_v2 }
  0x28   :  { %2598 = vmatpush3.bf16.msra.mxu0 %v2884_v21 }
  0x29   :  { %2599 = vmatprep.subr.bf16.mxu0 %v3008_v2 }
  0x2c   :  { %2600 = vmatpush3.bf16.msra.mxu0 %v2886_v22 }
  0x2d   :  { %2619 = vmatprep.subr.bf16.mxu0 %v3008_v2 }
  0x2f   :  { %2602 = vmatmul.mubr.msk.bf16.vlgmr.msra.gmra.mxu0 %vm159_vm3, %v3081_v3 }
  0x30   :  { %2620 = vmatpush3.bf16.msra.mxu0 %v543_v24  ;;  %2629 = vmatprep.mubr.msk.bf16.mxu0 %vm3009_vm0, %v3008_v2 }
  0x31   :  { %2621 = vmatprep.subr.bf16.mxu0 %v3008_v2 }
  0x34   :  { %2622 = vmatpush3.bf16.msra.mxu0 %v2890_v25 }
  0x35   :  { %2623 = vmatprep.subr.bf16.mxu0 %v3008_v2 }
  0x38   :  { %2624 = vmatpush3.bf16.msra.mxu0 %v2892_v26 }
  0x39   :  { %2625 = vmatprep.subr.bf16.mxu0 %v3008_v2 }
  0x3c   :  { %2626 = vmatpush3.bf16.msra.mxu0 %v2894_v27  ;;  %v2907_v27 = vld [vmem:[%s3731_s5 + $0x68] ss:$0 sps:$4 sm:$0xff]  }
  0x3d   :  { %2627 = vmatprep.subr.bf16.mxu0 %v3008_v2 }
  0x40   :  { %2628 = vmatpush3.bf16.msra.mxu0 %v2896_v28 }
  0x41   :  { %2639 = vmatprep.subr.bf16.mxu0 %v3008_v2 }
  0x43   :  { %2630 = vmatmul.mubr.msk.bf16.vlgmr.msra.gmra.mxu0 %vm159_vm3, %v3081_v3 }
  0x44   :  { %2649 = vmatprep.mubr.msk.bf16.mxu0 %vm3009_vm0, %v3008_v2  ;;  %2640 = vmatpush3.bf16.msra.mxu0 %v673_v55 }
  0x45   :  { %2641 = vmatprep.subr.bf16.mxu0 %v3008_v2 }
  0x48   :  { %2642 = vmatpush3.bf16.msra.mxu0 %v2899_v59 }
  0x49   :  { %2643 = vmatprep.subr.bf16.mxu0 %v3008_v2 }
  0x4c   :  { %2644 = vmatpush3.bf16.msra.mxu0 %v2901_v63 }
  0x4d   :  { %2645 = vmatprep.subr.bf16.mxu0 %v3008_v2 }
  0x50   :  { %2646 = vmatpush3.bf16.msra.mxu0 %v2903_v6 }
  0x51   :  { %2647 = vmatprep.subr.bf16.mxu0 %v3008_v2 }
  0x54   :  { %2648 = vmatpush3.bf16.msra.mxu0 %v2905_v8  ;;  %v2923_v8 = vld [vmem:[%s3731_s5 + $0x8c] ss:$0 sps:$4 sm:$0xff]  }
  0x55   :  { %2667 = vmatprep.subr.bf16.mxu0 %v3008_v2 }
  0xc7   :  { %v114_v29 = vpop.f32.mrf.mxu0 }
  0xc9   :  { %v2547_v31 = vpop.f32.mrf.mxu0 }
  0xcb   :  { %v117_v32 = vpop.f32.mrf.mxu0 }
  0xcc   :  { %v121_v33 = vpack.c.bf16 %v117_v32, %v114_v29  ;;  %v839_v32 = vsel %vm163_vm2, %v2907_v27, 0  ;;  %v2931_v27 = vld [vmem:[%s3730_s4 + $0xa8] sm:$0xff]  }
  0xcd   :  { %v2548_v35 = vpop.f32.mrf.mxu0 }
  0xce   :  { %2560 = vmatmul.mubr.msk.bf16.vlgmr.msra.gmra.mxu1 %vm159_vm3, %v121_v33  ;;  %v2911_v35 = vld [vmem:[%s3731_s5 + $0x50] sm:$0xff]  }
  0xcf   :  { %2578 = vmatpush3.bf16.msra.mxu1 %v320_v34  ;;  %2587 = vmatprep.mubr.msk.bf16.mxu1 %vm3009_vm0, %v3008_v2 }
  0xd0   :  { %2579 = vmatprep.subr.bf16.mxu1 %v3008_v2 }
  0xd3   :  { %2580 = vmatpush3.bf16.msra.mxu1 %v2879_v36  ;;  %v2915_v36 = vld [vmem:[%s3729_s3 + $0x84] sm:$0xff]  }
  0xd4   :  { %2581 = vmatprep.subr.bf16.mxu1 %v3008_v2 }
  0xd7   :  { %2582 = vmatpush3.bf16.msra.mxu1 %v2881_v37  ;;  %v2912_v37 = vld [vmem:[%s3731_s5 + $0x48] sm:$0xff]  }
  0xd8   :  { %2583 = vmatprep.subr.bf16.mxu1 %v3008_v2 }
  0xdb   :  { %2584 = vmatpush3.bf16.msra.mxu1 %v2883_v38  ;;  %v3251_v46 = vpop.f32.mrf.mxu0  ;;  %v2914_v38 = vld [vmem:[%s3730_s4 + $0x8c] ss:$0 sps:$4 sm:$0xff]  }
  0xdc   :  { %2585 = vmatprep.subr.bf16.mxu1 %v3008_v2 }
  0xdd   :  { %v2575_v47 = vpop.f32.mrf.mxu0 }
  0xde   :  { %v2922_v47 = vld [vmem:[%s3730_s4 + $0x6c] sm:$0xff]  }
  0xdf   :  { %2586 = vmatpush3.bf16.msra.mxu1 %v2885_v39  ;;  %v3253_v48 = vpop.f32.mrf.mxu0  ;;  %v1061_v39 = vsel %vm163_vm2, %v2914_v38, 0 }
  0xe0   :  { %2605 = vmatprep.subr.bf16.mxu1 %v3008_v2 }
  0xe1   :  { %v2576_v49 = vpop.f32.mrf.mxu0 }
  0xe2   :  { %2588 = vmatmul.mubr.msk.bf16.vlgmr.msra.gmra.mxu1 %vm159_vm3, %v121_v33 }
  0xe3   :  { %2606 = vmatpush3.bf16.msra.mxu1 %v472_v41  ;;  %2615 = vmatprep.mubr.msk.bf16.mxu1 %vm3009_vm0, %v3008_v2  ;;  %v2917_v41 = vld [vmem:[%s3729_s3 + $0x7c] sm:$0xff]  }
  0xe4   :  { %2607 = vmatprep.subr.bf16.mxu1 %v3008_v2 }
  0xe7   :  { %2608 = vmatpush3.bf16.msra.mxu1 %v2889_v42  ;;  %v2918_v42 = vld [vmem:[%s3730_s4 + $0x7c] sm:$0xff]  }
  0xe8   :  { %2609 = vmatprep.subr.bf16.mxu1 %v3008_v2 }
  0xeb   :  { %2610 = vmatpush3.bf16.msra.mxu1 %v2891_v43  ;;  %v2919_v43 = vld [vmem:[%s3729_s3 + $0x74] sm:$0xff]  }
  0xec   :  { %2611 = vmatprep.subr.bf16.mxu1 %v3008_v2 }
  0xef   :  { %2612 = vmatpush3.bf16.msra.mxu1 %v2893_v44  ;;  %v3255_v50 = vpop.f32.mrf.mxu0  ;;  %v2920_v44 = vld [vmem:[%s3730_s4 + $0x74] sm:$0xff]  }
  0xf0   :  { %2613 = vmatprep.subr.bf16.mxu1 %v3008_v2 }
  0xf1   :  { %v2603_v51 = vpop.f32.mrf.mxu0 }
  0xf3   :  { %2614 = vmatpush3.bf16.msra.mxu1 %v2895_v45  ;;  %v3257_v52 = vpop.f32.mrf.mxu0  ;;  %v2921_v45 = vld [vmem:[%s3729_s3 + $0x6c] sm:$0xff]  }
  0xf4   :  { %2633 = vmatprep.subr.bf16.mxu1 %v3008_v2 }
  0xf5   :  { %v2604_v53 = vpop.f32.mrf.mxu0 }
  0xf6   :  { %2616 = vmatmul.mubr.msk.bf16.vlgmr.msra.gmra.mxu1 %vm159_vm3, %v121_v33 }
  0xf7   :  { %2634 = vmatpush3.bf16.msra.mxu1 %v121_v33  ;;  %2635 = vmatprep.mubr.msk.bf16.mxu1 %vm3009_vm0, %v3008_v2  ;;  %v2908_v33 = vld [vmem:[%s3731_s5 + $0x60] sm:$0xff]  }
  0xf8   :  { %2653 = vmatprep.subr.bf16.mxu1 %v3008_v2 }
  0xfe   :  { %2636 = vmatmul.mubr.msk.bf16.vlgmr.msra.gmra.mxu1 %vm76_vm1, %v3088_v4  ;;  %v2902_v4 = vld [vmem:[%s3730_s4 + $0x58] sm:$0xff]  }
  0xff   :  { %2663 = vmatprep.mubr.msk.bf16.mxu1 %vm3009_vm0, %v3008_v2  ;;  %2654 = vmatpush3.bf16.msra.mxu1 %v756_v57 }
 0x100   :  { %2655 = vmatprep.subr.bf16.mxu1 %v3008_v2 }
 0x103   :  { %v3268_v58 = vpop.f32.mrf.mxu0  ;;  %2656 = vmatpush3.bf16.msra.mxu1 %v2900_v61 }
 0x104   :  { %2657 = vmatprep.subr.bf16.mxu1 %v3008_v2 }
 0x105   :  { %v2631_v60 = vpop.f32.mrf.mxu0 }
 0x107   :  { %v3277_v62 = vpop.f32.mrf.mxu0  ;;  %2658 = vmatpush3.bf16.msra.mxu1 %v2902_v4 }
 0x108   :  { %2659 = vmatprep.subr.bf16.mxu1 %v3008_v2 }
 0x109   :  { %v2632_v5 = vpop.f32.mrf.mxu0 }
 0x10b   :  { %2660 = vmatpush3.bf16.msra.mxu1 %v2904_v7 }
 0x10c   :  { %2661 = vmatprep.subr.bf16.mxu1 %v3008_v2 }
 0x10f   :  { %2662 = vmatpush3.bf16.msra.mxu1 %v2906_v9 }
 0x110   :  { %2681 = vmatprep.subr.bf16.mxu1 %v3008_v2 }
 0x18e   :  { %v3305_v10 = vpop.f32.mrf.mxu1 }
 0x18f   :  { %v276_v49 = vadd.f32 %v3251_v46, %v3305_v10 }
 0x190   :  { %v2561_v11 = vpop.f32.mrf.mxu1 }
 0x192   :  { %v3307_v12 = vpop.f32.mrf.mxu1 }
 0x193   :  { %v279_v60 = vadd.f32 %v3253_v48, %v3307_v12  ;;  %v1144_v48 = vsel %vm163_vm2, %v2923_v8, 0  ;;  %v2940_v8 = vld [vmem:[%s3731_s5 + $0xa0] sm:$0xff]  }
 0x194   :  { %v2562_v13 = vpop.f32.mrf.mxu1 }
 0x1a2   :  { %v3309_v14 = vpop.f32.mrf.mxu1 }
 0x1a3   :  { %v428_v51 = vadd.f32 %v3255_v50, %v3309_v14 }
 0x1a4   :  { %v2589_v15 = vpop.f32.mrf.mxu1 }
 0x1a5   :  { %v2925_v15 = vld [vmem:[%s3731_s5 + $0x7c] sm:$0xff]  }
 0x1a6   :  { %v3311_v16 = vpop.f32.mrf.mxu1 }
 0x1a7   :  { %v431_v61 = vadd.f32 %v3257_v52, %v3311_v16  ;;  %v2924_v52 = vld [vmem:[%s3731_s5 + $0x84] sm:$0xff]  }
 0x1a8   :  { %v2590_v17 = vpop.f32.mrf.mxu1 }
 0x1b6   :  { %v3313_v18 = vpop.f32.mrf.mxu1 }
 0x1b7   :  { %v580_v13 = vadd.f32 %v3268_v58, %v3313_v18  ;;  %v2926_v58 = vld [vmem:[%s3731_s5 + $0x74] sm:$0xff]  }
 0x1b8   :  { %v2617_v19 = vpop.f32.mrf.mxu1 }
 0x1ba   :  { %v3315_v20 = vpop.f32.mrf.mxu1 }
 0x1bb   :  { %v583_v19 = vadd.f32 %v3277_v62, %v3315_v20  ;;  %v2928_v62 = vld [vmem:[%s3729_s3 + $0xb0] ss:$0 sps:$4 sm:$0xff]  }
 0x1bc   :  { %v2618_v21 = vpop.f32.mrf.mxu1  ;;  %v1276_v20 = vsel %vm163_vm2, %v2928_v62, 0 }
 0x1be   :  { %v620_v22 = vpop.f32.mrf.mxu1 }
 0x1bf   :  { %v627_v24 = vmul.f32 2.0, %v620_v22 }
 0x1c0   :  { %v2637_v23 = vpop.f32.mrf.mxu1 }
 0x1c1   :  { %v629_v29 = vsub.f32 %v627_v24, %v3071_v0  ;;  %v2913_v0 = vld [vmem:[%s3729_s3 + $0x8c] ss:$0 sps:$4 sm:$0xff]   ;;  %v2929_v24 = vld [vmem:[%s3730_s4 + $0xb0] ss:$0 sps:$4 sm:$0xff]  }
 0x1c2   :  { %v623_v25 = vpop.f32.mrf.mxu1  ;;  %v978_v34 = vsel %vm163_vm2, %v2913_v0, 0  ;;  %v2927_v23 = vld [vmem:[%s3731_s5 + $0x6c] sm:$0xff]  }
 0x1c3   :  { %v628_v26 = vmul.f32 2.0, %v623_v25  ;;  %v1359_v25 = vsel %vm163_vm2, %v2929_v24, 0 }
 0x1c4   :  { %v2638_v28 = vpop.f32.mrf.mxu1 }
 0x1c5   :  { %v630_v30 = vsub.f32 %v628_v26, %v3076_v1  ;;  %v3341_v1 = vld [vmem:[%s3728_s2 + $0x8] sm:$0xff]   ;;  %v2932_v28 = vld [vmem:[%s3729_s3 + $0xa0] sm:$0xff]  }
 0x1c6   :  { %v2930_v26 = vld [vmem:[%s3729_s3 + $0xa8] sm:$0xff]  }
 0x1c7   :  { %v631_v31 = vpack.c.bf16 %v630_v30, %v629_v29  ;;  %v2933_v29 = vld [vmem:[%s3730_s4 + $0xa0] sm:$0xff]   ;;  %v2934_v30 = vld [vmem:[%s3729_s3 + $0x98] sm:$0xff]  }
 0x1c9   :  { %2650 = vmatmul.mubr.msk.bf16.vlgmr.msra.gmra.mxu0 %vm159_vm3, %v631_v31  ;;  %2664 = vmatmul.mubr.msk.bf16.vlgmr.msra.gmra.mxu1 %vm159_vm3, %v631_v31 }
 0x1ca   :  { %2668 = vmatpush3.bf16.msra.mxu0 %v839_v32  ;;  %2682 = vmatpush3.bf16.msra.mxu1 %v3081_v3  ;;  %v2909_v3 = vld [vmem:[%s3731_s5 + $0x58] sm:$0xff]   ;;  %v2936_v32 = vld [vmem:[%s3729_s3 + $0x90] sm:$0xff]  }
 0x1cb   :  { %2669 = vmatprep.subr.bf16.mxu0 %v3008_v2  ;;  %2683 = vmatprep.mubr.msk.bf16.mxu1 %vm3009_vm0, %v3008_v2 }
 0x1cc   :  { %2677 = vmatprep.mubr.msk.bf16.mxu0 %vm3009_vm0, %v3008_v2  ;;  %2687 = vmatprep.subr.bf16.mxu1 %v3008_v2 }
 0x1ce   :  { %2670 = vmatpush3.bf16.msra.mxu0 %v2908_v33  ;;  %v2937_v33 = vld [vmem:[%s3730_s4 + $0x90] sm:$0xff]  }
 0x1cf   :  { %2671 = vmatprep.subr.bf16.mxu0 %v3008_v2 }
 0x1d1   :  { %2684 = vmatmul.mubr.msk.bf16.vlgmr.msra.gmra.mxu1 %vm76_vm1, %v3341_v1 }
 0x1d2   :  { %2672 = vmatpush3.bf16.msra.mxu0 %v2909_v3  ;;  %2688 = vmatpush3.bf16.msra.mxu1 %v978_v34 }
 0x1d3   :  { %2673 = vmatprep.subr.bf16.mxu0 %v3008_v2  ;;  %2689 = vmatprep.subr.bf16.mxu1 %v3008_v2 }
 0x1d4   :  { %2697 = vmatprep.mubr.msk.bf16.mxu1 %vm3009_vm0, %v3008_v2 }
 0x1d6   :  { %2674 = vmatpush3.bf16.msra.mxu0 %v2911_v35  ;;  %2690 = vmatpush3.bf16.msra.mxu1 %v2915_v36 }
 0x1d7   :  { %2675 = vmatprep.subr.bf16.mxu0 %v3008_v2  ;;  %2691 = vmatprep.subr.bf16.mxu1 %v3008_v2 }
 0x1da   :  { %2676 = vmatpush3.bf16.msra.mxu0 %v2912_v37  ;;  %2692 = vmatpush3.bf16.msra.mxu1 %v2917_v41 }
 0x1db   :  { %2701 = vmatprep.subr.bf16.mxu0 %v3008_v2  ;;  %2693 = vmatprep.subr.bf16.mxu1 %v3008_v2 }
 0x1dd   :  { %2678 = vmatmul.mubr.msk.bf16.vlgmr.msra.gmra.mxu0 %vm159_vm3, %v631_v31  ;;  %v2935_v31 = vld [vmem:[%s3730_s4 + $0x98] sm:$0xff]  }
 0x1de   :  { %2702 = vmatpush3.bf16.msra.mxu0 %v1061_v39  ;;  %2711 = vmatprep.mubr.msk.bf16.mxu0 %vm3009_vm0, %v3008_v2 }
 0x1df   :  { %2703 = vmatprep.subr.bf16.mxu0 %v3008_v2  ;;  %2694 = vmatpush3.bf16.msra.mxu1 %v2919_v43 }
 0x1e0   :  { %2695 = vmatprep.subr.bf16.mxu1 %v3008_v2 }
 0x1e2   :  { %2704 = vmatpush3.bf16.msra.mxu0 %v2916_v40 }
 0x1e3   :  { %2705 = vmatprep.subr.bf16.mxu0 %v3008_v2  ;;  %2696 = vmatpush3.bf16.msra.mxu1 %v2921_v45 }
 0x1e4   :  { %2715 = vmatprep.subr.bf16.mxu1 %v3008_v2 }
 0x1e6   :  { %2706 = vmatpush3.bf16.msra.mxu0 %v2918_v42 }
 0x1e7   :  { %2707 = vmatprep.subr.bf16.mxu0 %v3008_v2 }
 0x1ea   :  { %2708 = vmatpush3.bf16.msra.mxu0 %v2920_v44 }
 0x1eb   :  { %2709 = vmatprep.subr.bf16.mxu0 %v3008_v2 }
 0x1ee   :  { %2710 = vmatpush3.bf16.msra.mxu0 %v2922_v47 }
 0x1ef   :  { %2735 = vmatprep.subr.bf16.mxu0 %v3008_v2 }
 0x289   :  { %v709_v53 = vpop.f32.mrf.mxu0  ;;  %v792_v54 = vpop.f32.mrf.mxu1 }
 0x28a   :  { %v3406_v55 = vadd.f32 %v709_v53, %v276_v49  ;;  %v3408_v56 = vadd.f32 %v792_v54, %v428_v51 }
 0x28b   :  { %v2651_v57 = vpop.f32.mrf.mxu0  ;;  %v2665_v59 = vpop.f32.mrf.mxu1 }
 0x28d   :  { %v712_v63 = vpop.f32.mrf.mxu0  ;;  %v795_v4 = vpop.f32.mrf.mxu1 }
 0x28e   :  { %v3414_v46 = vadd.f32 %v712_v63, %v279_v60  ;;  %v3416_v5 = vadd.f32 %v795_v4, %v431_v61  ;;  %v2938_v60 = vld [vmem:[%s3731_s5 + $0xb0] ss:$0 sps:$4 sm:$0xff]   ;;  %v2983_v63 = vld [vmem:[%s3726_s0] sm:$0xff] }
 0x28f   :  { %v2652_v50 = vpop.f32.mrf.mxu0  ;;  %v2666_v6 = vpop.f32.mrf.mxu1 }
 0x290   :  { %v1442_v6 = vsel %vm163_vm2, %v2938_v60, 0 }
 0x291   :  { %v929_v7 = vpop.f32.mrf.mxu1 }
 0x293   :  { %v2685_v9 = vpop.f32.mrf.mxu1 }
 0x294   :  { %v2941_v9 = vld [vmem:[%s3731_s5 + $0x98] sm:$0xff]  }
 0x295   :  { %v932_v10 = vpop.f32.mrf.mxu1 }
 0x296   :  { %v936_v11 = vpack.c.bf16 %v932_v10, %v929_v7  ;;  %v2939_v7 = vld [vmem:[%s3731_s5 + $0xa8] sm:$0xff]   ;;  %v2942_v10 = vld [vmem:[%s3731_s5 + $0x90] sm:$0xff]  }
 0x297   :  { %v2686_v12 = vpop.f32.mrf.mxu1 }
 0x298   :  { %2698 = vmatmul.mubr.msk.bf16.vlgmr.msra.gmra.mxu1 %vm159_vm3, %v936_v11  ;;  %2712 = vmatmul.mubr.msk.bf16.vlgmr.msra.gmra.mxu0 %vm159_vm3, %v936_v11  ;;  %v2945_v12 = vld [vmem:[%s3732_s6 + $0x8] sm:$0xff]  }
 0x299   :  { %2716 = vmatpush3.bf16.msra.mxu1 %v1144_v48  ;;  %2725 = vmatprep.mubr.msk.bf16.mxu1 %vm3009_vm0, %v3008_v2  ;;  %v2944_v48 = vld [vmem:[%s3732_s6 + $0x10] sm:$0xff]  }
 0x29a   :  { %2717 = vmatprep.subr.bf16.mxu1 %v3008_v2  ;;  %2745 = vmatprep.mubr.msk.bf16.mxu0 %vm3009_vm0, %v3008_v2 }
 0x29b   :  { %2736 = vmatpush3.bf16.msra.mxu0 %v1276_v20 }
 0x29c   :  { %2737 = vmatprep.subr.bf16.mxu0 %v3008_v2 }
 0x29d   :  { %v875_v14 = vpop.f32.mrf.mxu0  ;;  %2718 = vmatpush3.bf16.msra.mxu1 %v2924_v52  ;;  %v2946_v52 = vld [vmem:[%s3732_s6] sm:$0xff]  }
 0x29e   :  { %v3437_v16 = vadd.f32 %v875_v14, %v580_v13  ;;  %2719 = vmatprep.subr.bf16.mxu1 %v3008_v2  ;;  %v2344_v14 = vld [vmem:[%s3733_s7] ss:$0 sm:$0xff] }
 0x29f   :  { %v2679_v17 = vpop.f32.mrf.mxu0  ;;  %2738 = vmatpush3.bf16.msra.mxu0 %v2930_v26 }
 0x2a0   :  { %2739 = vmatprep.subr.bf16.mxu0 %v3008_v2 }
 0x2a1   :  { %v878_v21 = vpop.f32.mrf.mxu0  ;;  %2720 = vmatpush3.bf16.msra.mxu1 %v2925_v15 }
 0x2a2   :  { %v883_v18 = vadd.f32 %v878_v21, %v583_v19  ;;  %2721 = vmatprep.subr.bf16.mxu1 %v3008_v2 }
 0x2a3   :  { %v2680_v22 = vpop.f32.mrf.mxu0  ;;  %2740 = vmatpush3.bf16.msra.mxu0 %v2932_v28 }
 0x2a4   :  { %2741 = vmatprep.subr.bf16.mxu0 %v3008_v2 }
 0x2a5   :  { %2722 = vmatpush3.bf16.msra.mxu1 %v2926_v58 }
 0x2a6   :  { %2723 = vmatprep.subr.bf16.mxu1 %v3008_v2 }
 0x2a7   :  { %2742 = vmatpush3.bf16.msra.mxu0 %v2934_v30 }
 0x2a8   :  { %2743 = vmatprep.subr.bf16.mxu0 %v3008_v2 }
 0x2a9   :  { %2724 = vmatpush3.bf16.msra.mxu1 %v2927_v23 }
 0x2aa   :  { %2729 = vmatprep.subr.bf16.mxu1 %v3008_v2 }
 0x2ab   :  { %2744 = vmatpush3.bf16.msra.mxu0 %v2936_v32 }
 0x2ac   :  { %2726 = vmatmul.mubr.msk.bf16.vlgmr.msra.gmra.mxu1 %vm159_vm3, %v936_v11  ;;  %2763 = vmatprep.subr.bf16.mxu0 %v3008_v2 }
 0x2ad   :  { %2730 = vmatpush3.bf16.msra.mxu1 %v936_v11  ;;  %2731 = vmatprep.mubr.msk.bf16.mxu1 %vm3009_vm0, %v3008_v2  ;;  %v2943_v11 = vld [vmem:[%s3732_s6 + $0x18] sm:$0xff]  }
 0x2ae   :  { %2749 = vmatprep.subr.bf16.mxu1 %v3008_v2 }
 0x2b4   :  { %2732 = vmatmul.mubr.msk.bf16.vlgmr.msra.gmra.mxu1 %vm76_vm1, %v3341_v1 }
 0x2b5   :  { %2759 = vmatprep.mubr.msk.bf16.mxu1 %vm3009_vm0, %v3008_v2  ;;  %2750 = vmatpush3.bf16.msra.mxu1 %v1359_v25 }
 0x2b6   :  { %2751 = vmatprep.subr.bf16.mxu1 %v3008_v2 }
 0x2b9   :  { %2752 = vmatpush3.bf16.msra.mxu1 %v2931_v27 }
 0x2ba   :  { %2753 = vmatprep.subr.bf16.mxu1 %v3008_v2 }
 0x2bd   :  { %2754 = vmatpush3.bf16.msra.mxu1 %v2933_v29 }
 0x2be   :  { %2755 = vmatprep.subr.bf16.mxu1 %v3008_v2 }
 0x2c1   :  { %2756 = vmatpush3.bf16.msra.mxu1 %v2935_v31 }
 0x2c2   :  { %2757 = vmatprep.subr.bf16.mxu1 %v3008_v2 }
 0x2c5   :  { %2758 = vmatpush3.bf16.msra.mxu1 %v2937_v33 }
 0x2c6   :  { %2777 = vmatprep.subr.bf16.mxu1 %v3008_v2 }
 0x358   :  { %v1014_v0 = vpop.f32.mrf.mxu1  ;;  %v1097_v3 = vpop.f32.mrf.mxu0 }
 0x359   :  { %v3502_v34 = vadd.f32 %v1014_v0, %v3406_v55  ;;  %v3505_v35 = vadd.f32 %v1097_v3, %v3408_v56 }
 0x35a   :  { %v2699_v36 = vpop.f32.mrf.mxu1  ;;  %v2713_v37 = vpop.f32.mrf.mxu0 }
 0x35c   :  { %v1017_v38 = vpop.f32.mrf.mxu1  ;;  %v1100_v39 = vpop.f32.mrf.mxu0 }
 0x35d   :  { %v3508_v40 = vadd.f32 %v1017_v38, %v3414_v46  ;;  %v3511_v41 = vadd.f32 %v1100_v39, %v3416_v5  ;;  %v2984_v46 = vld [vmem:[%s3726_s0 + $0x8] sm:$0xff] }
 0x35e   :  { %v2700_v42 = vpop.f32.mrf.mxu1  ;;  %v2714_v43 = vpop.f32.mrf.mxu0 }
 0x36c   :  { %v1180_v44 = vpop.f32.mrf.mxu1 }
 0x36d   :  { %v3514_v45 = vadd.f32 %v1180_v44, %v3437_v16  ;;  %v2347_v16 = vld [vmem:[%s3734_s8] ss:$0 sm:$0xff] }
 0x36e   :  { %v2727_v47 = vpop.f32.mrf.mxu1 }
 0x370   :  { %v1183_v49 = vpop.f32.mrf.mxu1 }
 0x371   :  { %v3516_v51 = vadd.f32 %v1183_v49, %v883_v18 }
 0x372   :  { %v2728_v53 = vpop.f32.mrf.mxu1 }
 0x373   :  { %v40_v53 = vld [vmem:[%s3727_s1 + $0x8] sm:$0xff] }
 0x374   :  { %v1223_v54 = vpop.f32.mrf.mxu1 }
 0x375   :  { %v1230_v56 = vmul.f32 2.0, %v1223_v54 }
 0x376   :  { %v2733_v55 = vpop.f32.mrf.mxu1 }
 0x377   :  { %v1232_v4 = vsub.f32 %v1230_v56, %v2983_v63  ;;  %v2985_v63 = vld [vmem:[%s3728_s2] sm:$0xff]  }
 0x378   :  { %v1226_v57 = vpop.f32.mrf.mxu1 }
 0x379   :  { %v1231_v59 = vmul.f32 2.0, %v1226_v57 }
 0x37a   :  { %v2734_v61 = vpop.f32.mrf.mxu1 }
 0x37b   :  { %v1233_v5 = vsub.f32 %v1231_v59, %v2984_v46  ;;  %v2947_v61 = vld [vmem:[%s3732_s6 + $0x38] sm:$0xff]   ;;  %v2949_v46 = vld [vmem:[%s3732_s6 + $0x28] sm:$0xff]  }
 0x37d   :  { %v1234_v50 = vpack.c.bf16 %v1233_v5, %v1232_v4  ;;  %v2948_v4 = vld [vmem:[%s3732_s6 + $0x30] sm:$0xff]   ;;  %v2950_v5 = vld [vmem:[%s3732_s6 + $0x20] sm:$0xff]  }
 0x37f   :  { %2746 = vmatmul.mubr.msk.bf16.vlgmr.msra.gmra.mxu0 %vm159_vm3, %v1234_v50  ;;  %2760 = vmatmul.mubr.msk.bf16.vlgmr.msra.gmra.mxu1 %vm159_vm3, %v1234_v50 }
 0x380   :  { %2764 = vmatpush3.bf16.msra.mxu0 %v1442_v6  ;;  %2773 = vmatprep.mubr.msk.bf16.mxu0 %vm3009_vm0, %v3008_v2 }
 0x381   :  { %2765 = vmatprep.subr.bf16.mxu0 %v3008_v2  ;;  %2779 = vmatprep.mubr.msk.bf16.mxu1 %vm3009_vm0, %v3008_v2 }
 0x384   :  { %2766 = vmatpush3.bf16.msra.mxu0 %v2939_v7 }
 0x385   :  { %2767 = vmatprep.subr.bf16.mxu0 %v3008_v2 }
 0x388   :  { %2768 = vmatpush3.bf16.msra.mxu0 %v2940_v8 }
 0x389   :  { %2769 = vmatprep.subr.bf16.mxu0 %v3008_v2 }
 0x38c   :  { %2770 = vmatpush3.bf16.msra.mxu0 %v2941_v9 }
 0x38d   :  { %2771 = vmatprep.subr.bf16.mxu0 %v3008_v2 }
 0x390   :  { %2772 = vmatpush3.bf16.msra.mxu0 %v2942_v10 }
 0x391   :  { %2795 = vmatprep.subr.bf16.mxu0 %v3008_v2 }
 0x393   :  { %2774 = vmatmul.mubr.msk.bf16.vlgmr.msra.gmra.mxu0 %vm159_vm3, %v1234_v50 }
 0x394   :  { %2803 = vmatprep.mubr.msk.bf16.mxu0 %vm3009_vm0, %v3008_v2  ;;  %2796 = vmatpush3.bf16.msra.mxu0 %v2943_v11 }
 0x395   :  { %2797 = vmatprep.subr.bf16.mxu0 %v3008_v2 }
 0x398   :  { %2798 = vmatpush3.bf16.msra.mxu0 %v2944_v48 }
 0x399   :  { %2799 = vmatprep.subr.bf16.mxu0 %v3008_v2 }
 0x39c   :  { %2800 = vmatpush3.bf16.msra.mxu0 %v2945_v12 }
 0x39d   :  { %2801 = vmatprep.subr.bf16.mxu0 %v3008_v2 }
 0x3a0   :  { %2802 = vmatpush3.bf16.msra.mxu0 %v2946_v52  ;;  %v2951_v52 = vld [vmem:[%s3732_s6 + $0x58] sm:$0xff]  }
 0x3a1   :  { %2813 = vmatprep.subr.bf16.mxu0 %v3008_v2 }
 0x43f   :  { %v1312_v13 = vpop.f32.mrf.mxu0  ;;  %v1395_v15 = vpop.f32.mrf.mxu1 }
 0x440   :  { %v1319_v17 = vadd.f32 %v1312_v13, %v3502_v34  ;;  %v1402_v19 = vadd.f32 %v1395_v15, %v3505_v35  ;;  %v2952_v13 = vld [vmem:[%s3732_s6 + $0x50] sm:$0xff]   ;;  %v2954_v15 = vld [vmem:[%s3732_s6 + $0x48] sm:$0xff]  }
 0x441   :  { %v2747_v21 = vpop.f32.mrf.mxu0  ;;  %v2761_v58 = vpop.f32.mrf.mxu1 }
 0x442   :  { %v1494_v18 = vadd.f32 %v2344_v14, %v1319_v17  ;;  %v1515_v22 = vadd.f32 %v2347_v16, %v1402_v19  ;;  %v2956_v17 = vld [vmem:[%s3732_s6 + $0x40] sm:$0xff]   ;;  %v2957_v19 = vld [vmem:[%s3732_s6 + $0x68] sm:$0xff]  }
 0x443   :  { %v1315_v23 = vpop.f32.mrf.mxu0  ;;  %v1398_v62 = vpop.f32.mrf.mxu1  ;;  %v2958_v21 = vld [vmem:[%s3732_s6 + $0x60] sm:$0xff]  }
 0x444   :  { %v2345_v20 = vmul.f32 -1.442695, %v1494_v18  ;;  %v2348_v24 = vmul.f32 -1.442695, %v1515_v22  ;;  %v1320_v25 = vadd.f32 %v1315_v23, %v3508_v40  ;;  %v1403_v26 = vadd.f32 %v1398_v62, %v3511_v41 }
 0x445   :  { %v2748_v27 = vpop.f32.mrf.mxu0  ;;  %v2762_v28 = vpop.f32.mrf.mxu1 }
 0x446   :  { %2963 = vpow2.f32 %v2345_v20  ;;  %v1495_v29 = vadd.f32 %v2344_v14, %v1320_v25  ;;  %v1516_v30 = vadd.f32 %v2347_v16, %v1403_v26  ;;  %v2953_v14 = vld [vmem:[%s3732_s6 + $0x78] sm:$0xff]   ;;  %v2955_v16 = vld [vmem:[%s3732_s6 + $0x70] sm:$0xff]  }
 0x447   :  { %2965 = vpow2.f32 %v2348_v24 }
 0x448   :  { %v2346_v31 = vmul.f32 -1.442695, %v1495_v29  ;;  %v2349_v32 = vmul.f32 -1.442695, %v1516_v30 }
 0x44a   :  { %2967 = vpow2.f32 %v2346_v31 }
 0x44b   :  { %2969 = vpow2.f32 %v2349_v32 }
 0x453   :  { %v2964_v33 = vpop.eup %2963  ;;  %v1478_v0 = vpop.f32.mrf.mxu0 }
 0x454   :  { %v2966_v3 = vpop.eup %2965  ;;  %v1502_v34 = vadd.f32 1.0, %v2964_v33  ;;  %v3581_v35 = vadd.f32 %v1478_v0, %v3514_v45  ;;  %v39_v45 = vld [vmem:[%s3727_s1] sm:$0xff] }
 0x455   :  { %v1523_v36 = vadd.f32 1.0, %v2966_v3  ;;  %v2775_v37 = vpop.f32.mrf.mxu0 }
 0x456   :  { %v2962_v37 = vld [vmem:[%s3732_s6 + $0x80] sm:$0xff]  }
 0x457   :  { %v2968_v38 = vpop.eup %2967  ;;  %2971 = vrcp.f32 %v1523_v36  ;;  %v1481_v39 = vpop.f32.mrf.mxu0  ;;  %v2960_v36 = vld [vmem:[%s3732_s6 + $0x90] sm:$0xff]  }
 0x458   :  { %v2970_v40 = vpop.eup %2969  ;;  %2973 = vrcp.f32 %v1502_v34  ;;  %v1503_v41 = vadd.f32 1.0, %v2968_v38  ;;  %v3584_v42 = vadd.f32 %v1481_v39, %v3516_v51  ;;  %v2959_v34 = vld [vmem:[%s3732_s6 + $0x98] sm:$0xff]  }
 0x459   :  { %v1524_v43 = vadd.f32 1.0, %v2970_v40  ;;  %v2776_v44 = vpop.f32.mrf.mxu0 }
 0x45a   :  { %2975 = vrcp.f32 %v1503_v41 }
 0x45b   :  { %2977 = vrcp.f32 %v1524_v43 }
 0x464   :  { %v3589_v47 = vpop.eup %2971 }
 0x465   :  { %v2974_v49 = vpop.eup %2973  ;;  %v3595_v54 = vmul.f32 %v3589_v47, %v39_v45 }
 0x466   :  { %v3599_v56 = vmul.f32 %v2974_v49, %v39_v45 }
 0x467   :  { %v2976_v51 = vpop.eup %2975 }
 0x468   :  { %v3597_v55 = vpop.eup %2977  ;;  %v3601_v57 = vmul.f32 %v2976_v51, %v40_v53 }
 0x469   :  { %v3604_v59 = vmul.f32 %v3597_v55, %v40_v53 }
 0x46a   :  { %v1531_v60 = vpack.c.bf16 %v3601_v57, %v3599_v56 }
 0x46c   :  { %2778 = vmatpush3.bf16.msra.mxu1 %v1531_v60  ;;  %2804 = vmatmul.mubr.msk.bf16.vlgmr.msra.gmra.mxu0 %vm1615_vm4, %v1531_v60 }
 0x46d   :  { %2783 = vmatprep.subr.bf16.mxu1 %v3008_v2  ;;  %2821 = vmatprep.mubr.msk.bf16.mxu0 %vm3009_vm0, %v3008_v2 }
 0x46e   :  { %2814 = vmatpush3.bf16.msra.mxu0 %v2951_v52 }
 0x46f   :  { %2780 = vmatmul.mubr.msk.bf16.vlgmr.msra.gmra.mxu1 %vm76_vm1, %v2985_v63  ;;  %2815 = vmatprep.subr.bf16.mxu0 %v3008_v2 }
 0x470   :  { %2784 = vmatpush3.bf16.msra.mxu1 %v2947_v61  ;;  %2791 = vmatprep.mubr.msk.bf16.mxu1 %vm3009_vm0, %v3008_v2 }
 0x471   :  { %2785 = vmatprep.subr.bf16.mxu1 %v3008_v2 }
 0x472   :  { %2816 = vmatpush3.bf16.msra.mxu0 %v2952_v13 }
 0x473   :  { %2817 = vmatprep.subr.bf16.mxu0 %v3008_v2 }
 0x474   :  { %2786 = vmatpush3.bf16.msra.mxu1 %v2948_v4 }
 0x475   :  { %2787 = vmatprep.subr.bf16.mxu1 %v3008_v2 }
 0x476   :  { %2818 = vmatpush3.bf16.msra.mxu0 %v2954_v15 }
 0x477   :  { %2819 = vmatprep.subr.bf16.mxu0 %v3008_v2 }
 0x478   :  { %2788 = vmatpush3.bf16.msra.mxu1 %v2949_v46 }
 0x479   :  { %2789 = vmatprep.subr.bf16.mxu1 %v3008_v2 }
 0x47a   :  { %2820 = vmatpush3.bf16.msra.mxu0 %v2956_v17 }
 0x47b   :  { %2843 = vmatprep.subr.bf16.mxu0 %v3008_v2 }
 0x47c   :  { %2790 = vmatpush3.bf16.msra.mxu1 %v2950_v5 }
 0x47d   :  { %2807 = vmatprep.subr.bf16.mxu1 %v3008_v2 }
 0x52c   :  { %v3634_v50 = vpop.f32.mrf.mxu0 }
 0x52e   :  { %v2805_v6 = vpop.f32.mrf.mxu0 }
 0x52f   :  { %v1574_v7 = vpop.f32.mrf.mxu1 }
 0x530   :  { %v3636_v8 = vpop.f32.mrf.mxu0 }
 0x531   :  { %v2781_v9 = vpop.f32.mrf.mxu1 }
 0x532   :  { %v2806_v10 = vpop.f32.mrf.mxu0 }
 0x533   :  { %v1577_v11 = vpop.f32.mrf.mxu1 }
 0x534   :  { %v1581_v48 = vpack.c.bf16 %v1577_v11, %v1574_v7 }
 0x535   :  { %v2782_v12 = vpop.f32.mrf.mxu1 }
 0x536   :  { %2792 = vmatmul.mubr.msk.bf16.vlgmr.msra.gmra.mxu1 %vm1615_vm4, %v1581_v48  ;;  %v2411_v12 = vld [vmem:[%s3735_s9] ss:$0 sm:$0xff]  ;;  %s3010_s9 = smov [#allocation2]  }
 0x537   :  { %2808 = vmatpush3.bf16.msra.mxu1 %v1581_v48  ;;  %2809 = vmatprep.mubr.msk.bf16.mxu1 %vm3009_vm0, %v3008_v2  ;;  %s2127_s28 = sshll.u32 %s3010_s9, 4  ;;  %s2128_s28 = int_to_ptr.vmem [resolvable:$true] %s2127_s28 }
 0x538   :  { %2825 = vmatprep.subr.bf16.mxu1 %v3008_v2  ;;  %s2986_s2 = scalar_lea.vmem %s2128_s28, 256  ;;  %p2991_p1 = scmp.lt.s32.totalorder %s2128_s28, %s2128_s28 }
 0x539   :  { %p2987_p0 = scmp.ne.s32.totalorder %s2128_s28, %s2986_s2  ;;  %p2992_p2 = scmp.lt.s32.totalorder %s2986_s2, %s2986_s2 }
 0x53b   :  { %p2993_p3 = por %p2992_p2, %p2991_p1 }
 0x53d   :  { %p2994_p4 = pnand %p2993_p3, %p2987_p0 }
 0x53e   :  { %2810 = vmatmul.mubr.msk.bf16.vlgmr.msra.gmra.mxu1 %vm76_vm1, %v2985_v63 }
 0x53f   :  { %2826 = vmatpush3.bf16.msra.mxu1 %v1531_v60  ;;  %2827 = vmatprep.mubr.msk.bf16.mxu1 %vm3009_vm0, %v3008_v2 }
 0x540   :  { %2831 = vmatprep.subr.bf16.mxu1 %v3008_v2 }
 0x546   :  { %2828 = vmatmul.mubr.msk.bf16.vlgmr.msra.gmra.mxu1 %vm76_vm1, %v3341_v1 }
 0x547   :  { %2839 = vmatprep.mubr.msk.bf16.mxu1 %vm3009_vm0, %v3008_v2  ;;  %2832 = vmatpush3.bf16.msra.mxu1 %v2953_v14 }
 0x548   :  { %2833 = vmatprep.subr.bf16.mxu1 %v3008_v2 }
 0x54b   :  { %2834 = vmatpush3.bf16.msra.mxu1 %v2955_v16 }
 0x54c   :  { %2835 = vmatprep.subr.bf16.mxu1 %v3008_v2 }
 0x54f   :  { %2836 = vmatpush3.bf16.msra.mxu1 %v2957_v19  ;;  %v2114_v19 = vsub.f32 1.0, %v3589_v47 }
 0x550   :  { %2837 = vmatprep.subr.bf16.mxu1 %v3008_v2 }
 0x553   :  { %2838 = vmatpush3.bf16.msra.mxu1 %v2958_v21 }
 0x5f6   :  { %v1653_v58 = vpop.f32.mrf.mxu1 }
 0x5f7   :  { %v1722_v38 = vadd.f32 %v3634_v50, %v1653_v58 }
 0x5f8   :  { %v2793_v18 = vpop.f32.mrf.mxu1 }
 0x5f9   :  { %v2115_v18 = vsub.f32 1.0, %v3597_v55 }
 0x5fa   :  { %v1656_v22 = vpop.f32.mrf.mxu1 }
 0x5fb   :  { %v1725_v43 = vadd.f32 %v3636_v8, %v1656_v22 }
 0x5fc   :  { %v2794_v23 = vpop.f32.mrf.mxu1 }
 0x5fe   :  { %v1762_v62 = vpop.f32.mrf.mxu1 }
 0x5ff   :  { %v1769_v24 = vmul.f32 2.0, %v1762_v62 }
 0x600   :  { %v2811_v20 = vpop.f32.mrf.mxu1 }
 0x601   :  { %v1771_v28 = vsub.f32 %v1769_v24, %v3599_v56 }
 0x602   :  { %v1765_v25 = vpop.f32.mrf.mxu1 }
 0x603   :  { %v1770_v26 = vmul.f32 2.0, %v1765_v25 }
 0x604   :  { %v2812_v27 = vpop.f32.mrf.mxu1 }
 0x605   :  { %v1772_v29 = vsub.f32 %v1770_v26, %v3601_v57 }
 0x606   :  { %v1887_v30 = vpop.f32.mrf.mxu1 }
 0x607   :  { %v1773_v31 = vpack.c.bf16 %v1772_v29, %v1771_v28 }
 0x608   :  { %v2829_v32 = vpop.f32.mrf.mxu1 }
 0x609   :  { %2822 = vmatmul.mubr.msk.bf16.vlgmr.msra.gmra.mxu0 %vm1615_vm4, %v1773_v31 }
 0x60a   :  { %v1890_v33 = vpop.f32.mrf.mxu1  ;;  %2845 = vmatprep.mubr.msk.bf16.mxu0 %vm3009_vm0, %v3008_v2 }
 0x60b   :  { %v1894_v0 = vpack.c.bf16 %v1890_v33, %v1887_v30 }
 0x60c   :  { %v2830_v3 = vpop.f32.mrf.mxu1 }
 0x60d   :  { %2840 = vmatmul.mubr.msk.bf16.vlgmr.msra.gmra.mxu1 %vm1615_vm4, %v1894_v0  ;;  %2844 = vmatpush3.bf16.msra.mxu0 %v1894_v0 }
 0x60e   :  { %2849 = vmatprep.subr.bf16.mxu0 %v3008_v2 }
 0x611   :  { %2846 = vmatmul.mubr.msk.bf16.vlgmr.msra.gmra.mxu0 %vm76_vm1, %v3341_v1  ;;  %v2961_v1 = vld [vmem:[%s3732_s6 + $0x88] sm:$0xff]  }
 0x612   :  { %2857 = vmatprep.mubr.msk.bf16.mxu0 %vm3009_vm0, %v3008_v2  ;;  %2850 = vmatpush3.bf16.msra.mxu0 %v2959_v34 }
 0x613   :  { %2851 = vmatprep.subr.bf16.mxu0 %v3008_v2 }
 0x616   :  { %2852 = vmatpush3.bf16.msra.mxu0 %v2960_v36 }
 0x617   :  { %2853 = vmatprep.subr.bf16.mxu0 %v3008_v2 }
 0x61a   :  { %2854 = vmatpush3.bf16.msra.mxu0 %v2961_v1 }
 0x61b   :  { %2855 = vmatprep.subr.bf16.mxu0 %v3008_v2 }
 0x61e   :  { %2856 = vmatpush3.bf16.msra.mxu0 %v2962_v37 }
 0x6c9   :  { %v1844_v39 = vpop.f32.mrf.mxu0 }
 0x6ca   :  { %v1851_v40 = vadd.f32 %v1844_v39, %v1722_v38 }
 0x6cb   :  { %v2823_v41 = vpop.f32.mrf.mxu0 }
 0x6cd   :  { %v1847_v44 = vpop.f32.mrf.mxu0  ;;  %v1965_v45 = vpop.f32.mrf.mxu1 }
 0x6ce   :  { %v1852_v49 = vadd.f32 %v1847_v44, %v1725_v43  ;;  %v1972_v53 = vadd.f32 %v1965_v45, %v1851_v40 }
 0x6cf   :  { %v2824_v51 = vpop.f32.mrf.mxu0  ;;  %v2841_v60 = vpop.f32.mrf.mxu1 }
 0x6d1   :  { %v1968_v61 = vpop.f32.mrf.mxu1  ;;  %v2008_v2 = vpop.f32.mrf.mxu0 }
 0x6d2   :  { %v1973_v63 = vadd.f32 %v1968_v61, %v1852_v49  ;;  %v2015_v5 = vmul.f32 2.0, %v2008_v2 }
 0x6d3   :  { %v2842_v4 = vpop.f32.mrf.mxu1  ;;  %v2847_v46 = vpop.f32.mrf.mxu0 }
 0x6d4   :  { %v2017_v9 = vsub.f32 %v2015_v5, %v3599_v56 }
 0x6d5   :  { %v2011_v6 = vpop.f32.mrf.mxu0 }
 0x6d6   :  { %v2016_v7 = vmul.f32 2.0, %v2011_v6 }
 0x6d7   :  { %v2848_v50 = vpop.f32.mrf.mxu0 }
 0x6d8   :  { %v2018_v10 = vsub.f32 %v2016_v7, %v3601_v57 }
 0x6da   :  { %v2019_v8 = vpack.c.bf16 %v2018_v10, %v2017_v9 }
 0x6dc   :  { %2858 = vmatmul.mubr.msk.bf16.vlgmr.msra.gmra.mxu0 %vm1615_vm4, %v2019_v8 }
 0x79c   :  { %v2090_v11 = vpop.f32.mrf.mxu0 }
 0x79d   :  { %v2097_v48 = vadd.f32 %v2090_v11, %v1972_v53 }
 0x79e   :  { %v2859_v52 = vpop.f32.mrf.mxu0 }
 0x79f   :  { %v2099_v13 = vadd.f32 %v2097_v48, %v3581_v35 }
 0x7a0   :  { %v2093_v14 = vpop.f32.mrf.mxu0 }
 0x7a1   :  { %v2108_v15 = vadd.f32 %v2411_v12, %v2099_v13  ;;  %v2098_v16 = vadd.f32 %v2093_v14, %v1973_v63 }
 0x7a2   :  { %v2860_v17 = vpop.f32.mrf.mxu0 }
 0x7a3   :  { %2979 = vtanh.f32 %v2108_v15  ;;  %v2100_v56 = vadd.f32 %v2098_v16, %v3584_v42 }
 0x7a5   :  { %v2109_v57 = vadd.f32 %v2411_v12, %v2100_v56 }
 0x7a7   :  { %2981 = vtanh.f32 %v2109_v57 }
 0x7b0   :  { %v2980_v21 = vpop.eup %2979 }
 0x7b1   :  { %v2116_v58 = vmul.f32 %v2980_v21, %v2114_v19 }
 0x7b3   :  { %v2118_v22 = vadd.f32 %v2116_v58, %v3595_v54 }
 0x7b4   :  { %v2982_v23 = vpop.eup %2981 }
 0x7b5   :  { %v2117_v35 = vmul.f32 %v2982_v23, %v2115_v18  ;;  %2120 = vst.msk [vmem:[#allocation2] sm:$0xff] %vm1615_vm4, %v2118_v22 }
 0x7b7   :  { %v2119_v62 = vadd.f32 %v2117_v35, %v3604_v59 }
 0x7b9   :  { %2121 = vst.msk [vmem:[#allocation2 + $0x8] sm:$0xff] %vm1615_vm4, %v2119_v62 }
 0x7ba   :  { %2997 = shalt.err (!%p2994_p4)
}
 0x7bb   :  { %s3011_s29 = smov 128   ;;  %s3012_s30 = smov 8  }
 0x7bc   :  { %2133 = dma.vmem_to_hbm [thread:$0]  %s2128_s28, 256, %s3736_s10, [#allocation3], %s3011_s29, %s3011_s29, %s3012_s30  }
 0x7bd   :  { %3006 = dma.done.wait [#allocation3], 256  }
 0x7be   :  { %3007 = vsyncadd [#allocation3], 4294967040 }
 0x7bf   :  { %2137 = vsyncpa [#allocation3], 1 }

</bundles_post_ra>
